<compile_context>
chip_gen: v7x
topology: tpu7x:2x2x1
jax: 0.10.0
libtpu: 0.0.40
codegen_flags: <defaults>
</compile_context>

<pallas_src>
import jax
import jax.numpy as jnp
from jax.experimental import pallas as pl
from jax.experimental.pallas import tpu as pltpu


def _round_up(x, m):
    return ((x + m - 1) // m) * m


# --------------------------------------------------------------------------- #
# Kernel
# --------------------------------------------------------------------------- #
def distance_mlp_kernel(a_ref, bt_ref,
                        w1, b1, w2, b2, w3, b3, w4, b4, w5, b5, w6, b6,
                        o_ref):
    # Pairwise squared distances as a single augmented MXU matmul:
    #   A'[i] . B'[j] = ||a_i||^2 + ||b_j||^2 - 2 a_i.b_j = x[i, j]
    # clamp at 0 to guard against floating-point cancellation.
    x = jnp.maximum(
        jnp.dot(a_ref[...], bt_ref[...], preferred_element_type=jnp.float32),
        0.0)

    # MLP hot path: 6 lane-dense MXU matmuls, bf16 operands, f32 accumulation.
    def dense(h, w_r, bias_r):
        return jnp.dot(h.astype(jnp.bfloat16), w_r[...],
                       preferred_element_type=jnp.float32) + bias_r[...]

    h = jnp.maximum(dense(x, w1, b1), 0.0)
    h = jnp.maximum(dense(h, w2, b2), 0.0)
    h = jnp.maximum(dense(h, w3, b3), 0.0)
    h = jnp.maximum(dense(h, w4, b4), 0.0)
    h = jnp.maximum(dense(h, w5, b5), 0.0)
    o_ref[...] = dense(h, w6, b6).astype(o_ref.dtype)


# --------------------------------------------------------------------------- #
# Parameter / operand preparation (one-time, hoisted out of the forward path)
# --------------------------------------------------------------------------- #
def init_params(key, in_channel, hid_channel, out_channel):
    """PyTorch-style Linear init (U(-1/sqrt(fan_in), +1/sqrt(fan_in))), f32, unpadded."""
    dims = [in_channel, hid_channel * 4, hid_channel * 3, hid_channel * 2,
            hid_channel, 128, out_channel]
    params = []
    for i in range(len(dims) - 1):
        fan_in, fan_out = dims[i], dims[i + 1]
        key, kw, kb = jax.random.split(key, 3)
        bound = float(fan_in) ** -0.5
        w = jax.random.uniform(kw, (fan_in, fan_out), jnp.float32, -bound, bound)
        bias = jax.random.uniform(kb, (fan_out,), jnp.float32, -bound, bound)
        params.append((w, bias))
    return params


def prepare_distance(params, b):
    """One-time prep: pad layer widths to multiples of 128 (weights bf16 (in,out),
    biases (1,out) f32) and build the augmented, pre-transposed B' operand."""
    padded = []
    for w, bias in params:
        fi, fo = w.shape
        fip, fop = _round_up(fi, 128), _round_up(fo, 128)
        wp = jnp.zeros((fip, fop), jnp.float32).at[:fi, :fo].set(w).astype(jnp.bfloat16)
        bp = jnp.zeros((1, fop), jnp.float32).at[0, :fo].set(bias)
        padded.append((wp, bp))

    m, feat = b.shape
    in_channel = params[0][0].shape[0]
    assert m == in_channel, "m must equal in_channel (distance matrix feeds Linear1)"
    m_pad = padded[0][0].shape[0]                    # padded in_channel (lane-dense x)
    # Augmented feature dim: [b, 1, ||b||^2]; pad to 16 (bf16 sublane packing for B').
    feat_aug_pad = _round_up(feat + 2, 16)

    b32 = b.astype(jnp.float32)
    bt_aug = jnp.zeros((feat_aug_pad, m_pad), jnp.float32)
    bt_aug = bt_aug.at[:feat, :m].set(b32.T)
    bt_aug = bt_aug.at[feat, :m].set(1.0)
    bt_aug = bt_aug.at[feat + 1, :m].set(jnp.sum(b32 * b32, axis=1))
    bt_aug = bt_aug.astype(jnp.bfloat16)

    return {
        "padded_params": padded,
        "bt_aug": bt_aug,
        "feat": feat,
        "feat_aug_pad": feat_aug_pad,
        "m_pad": m_pad,
        "out_channel": params[-1][0].shape[1],
        "out_pad": padded[-1][1].shape[1],
    }


# --------------------------------------------------------------------------- #
# Forward
# --------------------------------------------------------------------------- #
def distance_forward(a, prep, *, tn=512):
    """Forward pass. `tn` = max row tile; sweep 256..1024 on v6e/v7x."""
    n, feat = a.shape
    assert feat == prep["feat"]
    padded = prep["padded_params"]
    feat_aug_pad = prep["feat_aug_pad"]
    m_pad = prep["m_pad"]
    out_pad = prep["out_pad"]

    # Load-balanced row tiling: >=2 grid steps (v7x megacore) and tile chosen so
    # padded-row waste is at most 8*grid rows (no near-empty tail tile).
    tn = max(8, _round_up(tn, 8))
    n_r = _round_up(n, 8)
    grid = max(2, pl.cdiv(n_r, tn))
    tile = _round_up(pl.cdiv(n_r, grid), 8)
    n_pad = grid * tile

    # Augmented LHS A' = [-2a | ||a||^2 | 1]; padded rows are zero -> harmless.
    a32 = a.astype(jnp.float32)
    a_aug = jnp.zeros((n_pad, feat_aug_pad), jnp.float32)
    a_aug = a_aug.at[:n, :feat].set(-2.0 * a32)
    a_aug = a_aug.at[:n, feat].set(jnp.sum(a32 * a32, axis=1))
    a_aug = a_aug.at[:n, feat + 1].set(1.0)
    a_aug = a_aug.astype(jnp.bfloat16)

    def resident_spec(shape):
        # Constant operand (index_map always (0,0)): single-buffer -> half the
        # VMEM, no per-step re-DMA / pipeline bookkeeping.
        return pl.BlockSpec(shape, lambda i: (0, 0), pipeline_mode=pl.Buffered(1))

    in_specs = [
        pl.BlockSpec((tile, feat_aug_pad), lambda i: (i, 0)),   # A' rows: pipelined
        resident_spec((feat_aug_pad, m_pad)),                   # B' (augmented b^T)
    ]
    flat = [a_aug, prep["bt_aug"]]
    for wp, bp in padded:
        in_specs.append(resident_spec(wp.shape))
        in_specs.append(resident_spec(bp.shape))
        flat.extend([wp, bp])

    # Scoped-VMEM estimate: resident weights/biases/B' (single-buffered) +
    # double-buffered A'/output blocks + the f32 activation chain.
    widest = max(w.shape[1] for w, _ in padded)
    est = (sum(w.size * 2 + bias.size * 4 for w, bias in padded)
           + feat_aug_pad * m_pad * 2
           + 2 * tile * feat_aug_pad * 2
           + 2 * tile * out_pad * 2
           + 2 * tile * widest * 4)
    vmem_limit = None
    if est > 24 * 1024 * 1024:
        # Only raise the limit for large configs; cap below v7x's 64 MiB physical VMEM.
        vmem_limit = min(int(est * 1.5), 60 * 1024 * 1024)

    out = pl.pallas_call(
        distance_mlp_kernel,
        out_shape=jax.ShapeDtypeStruct((n_pad, out_pad), jnp.bfloat16),
        grid_spec=pltpu.PrefetchScalarGridSpec(
            num_scalar_prefetch=0,
            grid=(grid,),
            in_specs=in_specs,
            out_specs=pl.BlockSpec((tile, out_pad), lambda i: (i, 0)),
        ),
        compiler_params=pltpu.CompilerParams(
            dimension_semantics=("parallel",),
            vmem_limit_bytes=vmem_limit,
        ),
    )(*flat)

    # Lane-dense bf16 writeback; slice off padding and upcast for the caller.
    return out[:n, :prep["out_channel"]].astype(jnp.float32)


def reference_forward(a, b, params):
    """Pure-JAX reference matching the PyTorch module (f32)."""
    x = jnp.sum((a[:, None, :] - b[None, :, :]) ** 2, axis=2)
    for i, (w, bias) in enumerate(params):
        x = x @ w + bias
        if i < len(params) - 1:
            x = jnp.maximum(x, 0.0)
    return x


if __name__ == "__main__":
    # Small but structurally identical to the PyTorch module.
    in_channel = 5       # m (number of b points) must equal in_channel
    out_channel = 5
    hid_channel = 32     # layer widths: 5 -> 128 -> 96 -> 64 -> 32 -> 128 -> 5

    n, m, feat = 300, in_channel, 4

    key = jax.random.PRNGKey(0)
    ka, kb, kp = jax.random.split(key, 3)
    a = jax.random.normal(ka, (n, feat), jnp.float32)
    b = jax.random.normal(kb, (m, feat), jnp.float32)
    params = init_params(kp, in_channel, hid_channel, out_channel)

    prep = prepare_distance(params, b)          # one-time padding / augmentation
    out = jax.block_until_ready(distance_forward(a, prep))
    assert out.shape == (n, out_channel), out.shape
    assert out.dtype == jnp.float32

    # Loose numerical sanity check (kernel uses bf16 MXU operands, f32 accumulation).
    ref = jax.block_until_ready(reference_forward(a, b, params))
    max_err = float(jnp.max(jnp.abs(out - ref)))
    scale = float(jnp.max(jnp.abs(ref))) + 1.0
    assert max_err < 0.1 * scale, (max_err, scale)

    print("KERNEL_OK")
</pallas_src>

<mosaic_0001>
module attributes {stable_mosaic.version = 11 : i64} {
  func.func @distance_mlp_kernel(%arg0: i32, %arg1: memref<152x16xbf16, #tpu.memory_space<vmem>>, %arg2: memref<16x128xbf16, #tpu.memory_space<vmem>>, %arg3: memref<128x128xbf16, #tpu.memory_space<vmem>>, %arg4: memref<1x128xf32, #tpu.memory_space<vmem>>, %arg5: memref<128x128xbf16, #tpu.memory_space<vmem>>, %arg6: memref<1x128xf32, #tpu.memory_space<vmem>>, %arg7: memref<128x128xbf16, #tpu.memory_space<vmem>>, %arg8: memref<1x128xf32, #tpu.memory_space<vmem>>, %arg9: memref<128x128xbf16, #tpu.memory_space<vmem>>, %arg10: memref<1x128xf32, #tpu.memory_space<vmem>>, %arg11: memref<128x128xbf16, #tpu.memory_space<vmem>>, %arg12: memref<1x128xf32, #tpu.memory_space<vmem>>, %arg13: memref<128x128xbf16, #tpu.memory_space<vmem>>, %arg14: memref<1x128xf32, #tpu.memory_space<vmem>>, %arg15: memref<152x128xbf16, #tpu.memory_space<vmem>>) attributes {dimension_semantics = [#tpu.dimension_semantics<parallel>], iteration_bounds = array<i64: 2>, scalar_prefetch = 0 : i64, scratch_operands = 0 : i64, tpu.core_type = #tpu.core_type<tc>, window_params = [{transform_indices = @transform_0, window_bounds = array<i64: 152, 16>}, {pipeline_mode = #tpu.pipeline_mode<synchronous>, transform_indices = @transform_1, window_bounds = array<i64: 16, 128>}, {pipeline_mode = #tpu.pipeline_mode<synchronous>, transform_indices = @transform_2, window_bounds = array<i64: 128, 128>}, {pipeline_mode = #tpu.pipeline_mode<synchronous>, transform_indices = @transform_3, window_bounds = array<i64: 1, 128>}, {pipeline_mode = #tpu.pipeline_mode<synchronous>, transform_indices = @transform_4, window_bounds = array<i64: 128, 128>}, {pipeline_mode = #tpu.pipeline_mode<synchronous>, transform_indices = @transform_5, window_bounds = array<i64: 1, 128>}, {pipeline_mode = #tpu.pipeline_mode<synchronous>, transform_indices = @transform_6, window_bounds = array<i64: 128, 128>}, {pipeline_mode = #tpu.pipeline_mode<synchronous>, transform_indices = @transform_7, window_bounds = array<i64: 1, 128>}, {pipeline_mode = #tpu.pipeline_mode<synchronous>, transform_indices = @transform_8, window_bounds = array<i64: 128, 128>}, {pipeline_mode = #tpu.pipeline_mode<synchronous>, transform_indices = @transform_9, window_bounds = array<i64: 1, 128>}, {pipeline_mode = #tpu.pipeline_mode<synchronous>, transform_indices = @transform_10, window_bounds = array<i64: 128, 128>}, {pipeline_mode = #tpu.pipeline_mode<synchronous>, transform_indices = @transform_11, window_bounds = array<i64: 1, 128>}, {pipeline_mode = #tpu.pipeline_mode<synchronous>, transform_indices = @transform_12, window_bounds = array<i64: 128, 128>}, {pipeline_mode = #tpu.pipeline_mode<synchronous>, transform_indices = @transform_13, window_bounds = array<i64: 1, 128>}, {transform_indices = @transform_14, window_bounds = array<i64: 152, 128>}]} {
    %c0 = arith.constant 0 : index
    %c0_0 = arith.constant 0 : index
    %0 = vector.load %arg1[%c0, %c0_0] : memref<152x16xbf16, #tpu.memory_space<vmem>>, vector<152x16xbf16>
    %c0_1 = arith.constant 0 : index
    %c0_2 = arith.constant 0 : index
    %1 = vector.load %arg2[%c0_1, %c0_2] : memref<16x128xbf16, #tpu.memory_space<vmem>>, vector<16x128xbf16>
    %cst = arith.constant dense<0.000000e+00> : vector<152x128xf32>
    %2 = tpu.matmul %0, %1, %cst {dimension_numbers = #tpu.dot_dimension_numbers<[1], [0], [0], [1], [0, 0, 1, 1], [], []>} : vector<152x16xbf16>, vector<16x128xbf16>, vector<152x128xf32> -> vector<152x128xf32>
    %cst_3 = arith.constant 0.000000e+00 : f32
    %3 = vector.broadcast %cst_3 : f32 to vector<152x128xf32>
    %4 = arith.maximumf %2, %3 : vector<152x128xf32>
    %5 = arith.truncf %4 : vector<152x128xf32> to vector<152x128xbf16>
    %c0_4 = arith.constant 0 : index
    %c0_5 = arith.constant 0 : index
    %6 = vector.load %arg3[%c0_4, %c0_5] : memref<128x128xbf16, #tpu.memory_space<vmem>>, vector<128x128xbf16>
    %cst_6 = arith.constant dense<0.000000e+00> : vector<152x128xf32>
    %7 = tpu.matmul %5, %6, %cst_6 {dimension_numbers = #tpu.dot_dimension_numbers<[1], [0], [0], [1], [0, 0, 1, 1], [], []>} : vector<152x128xbf16>, vector<128x128xbf16>, vector<152x128xf32> -> vector<152x128xf32>
    %c0_7 = arith.constant 0 : index
    %c0_8 = arith.constant 0 : index
    %8 = vector.load %arg4[%c0_7, %c0_8] : memref<1x128xf32, #tpu.memory_space<vmem>>, vector<1x128xf32>
    %9 = vector.broadcast %8 : vector<1x128xf32> to vector<152x128xf32>
    %10 = arith.addf %7, %9 : vector<152x128xf32>
    %cst_9 = arith.constant 0.000000e+00 : f32
    %11 = vector.broadcast %cst_9 : f32 to vector<152x128xf32>
    %12 = arith.maximumf %10, %11 : vector<152x128xf32>
    %13 = arith.truncf %12 : vector<152x128xf32> to vector<152x128xbf16>
    %c0_10 = arith.constant 0 : index
    %c0_11 = arith.constant 0 : index
    %14 = vector.load %arg5[%c0_10, %c0_11] : memref<128x128xbf16, #tpu.memory_space<vmem>>, vector<128x128xbf16>
    %cst_12 = arith.constant dense<0.000000e+00> : vector<152x128xf32>
    %15 = tpu.matmul %13, %14, %cst_12 {dimension_numbers = #tpu.dot_dimension_numbers<[1], [0], [0], [1], [0, 0, 1, 1], [], []>} : vector<152x128xbf16>, vector<128x128xbf16>, vector<152x128xf32> -> vector<152x128xf32>
    %c0_13 = arith.constant 0 : index
    %c0_14 = arith.constant 0 : index
    %16 = vector.load %arg6[%c0_13, %c0_14] : memref<1x128xf32, #tpu.memory_space<vmem>>, vector<1x128xf32>
    %17 = vector.broadcast %16 : vector<1x128xf32> to vector<152x128xf32>
    %18 = arith.addf %15, %17 : vector<152x128xf32>
    %cst_15 = arith.constant 0.000000e+00 : f32
    %19 = vector.broadcast %cst_15 : f32 to vector<152x128xf32>
    %20 = arith.maximumf %18, %19 : vector<152x128xf32>
    %21 = arith.truncf %20 : vector<152x128xf32> to vector<152x128xbf16>
    %c0_16 = arith.constant 0 : index
    %c0_17 = arith.constant 0 : index
    %22 = vector.load %arg7[%c0_16, %c0_17] : memref<128x128xbf16, #tpu.memory_space<vmem>>, vector<128x128xbf16>
    %cst_18 = arith.constant dense<0.000000e+00> : vector<152x128xf32>
    %23 = tpu.matmul %21, %22, %cst_18 {dimension_numbers = #tpu.dot_dimension_numbers<[1], [0], [0], [1], [0, 0, 1, 1], [], []>} : vector<152x128xbf16>, vector<128x128xbf16>, vector<152x128xf32> -> vector<152x128xf32>
    %c0_19 = arith.constant 0 : index
    %c0_20 = arith.constant 0 : index
    %24 = vector.load %arg8[%c0_19, %c0_20] : memref<1x128xf32, #tpu.memory_space<vmem>>, vector<1x128xf32>
    %25 = vector.broadcast %24 : vector<1x128xf32> to vector<152x128xf32>
    %26 = arith.addf %23, %25 : vector<152x128xf32>
    %cst_21 = arith.constant 0.000000e+00 : f32
    %27 = vector.broadcast %cst_21 : f32 to vector<152x128xf32>
    %28 = arith.maximumf %26, %27 : vector<152x128xf32>
    %29 = arith.truncf %28 : vector<152x128xf32> to vector<152x128xbf16>
    %c0_22 = arith.constant 0 : index
    %c0_23 = arith.constant 0 : index
    %30 = vector.load %arg9[%c0_22, %c0_23] : memref<128x128xbf16, #tpu.memory_space<vmem>>, vector<128x128xbf16>
    %cst_24 = arith.constant dense<0.000000e+00> : vector<152x128xf32>
    %31 = tpu.matmul %29, %30, %cst_24 {dimension_numbers = #tpu.dot_dimension_numbers<[1], [0], [0], [1], [0, 0, 1, 1], [], []>} : vector<152x128xbf16>, vector<128x128xbf16>, vector<152x128xf32> -> vector<152x128xf32>
    %c0_25 = arith.constant 0 : index
    %c0_26 = arith.constant 0 : index
    %32 = vector.load %arg10[%c0_25, %c0_26] : memref<1x128xf32, #tpu.memory_space<vmem>>, vector<1x128xf32>
    %33 = vector.broadcast %32 : vector<1x128xf32> to vector<152x128xf32>
    %34 = arith.addf %31, %33 : vector<152x128xf32>
    %cst_27 = arith.constant 0.000000e+00 : f32
    %35 = vector.broadcast %cst_27 : f32 to vector<152x128xf32>
    %36 = arith.maximumf %34, %35 : vector<152x128xf32>
    %37 = arith.truncf %36 : vector<152x128xf32> to vector<152x128xbf16>
    %c0_28 = arith.constant 0 : index
    %c0_29 = arith.constant 0 : index
    %38 = vector.load %arg11[%c0_28, %c0_29] : memref<128x128xbf16, #tpu.memory_space<vmem>>, vector<128x128xbf16>
    %cst_30 = arith.constant dense<0.000000e+00> : vector<152x128xf32>
    %39 = tpu.matmul %37, %38, %cst_30 {dimension_numbers = #tpu.dot_dimension_numbers<[1], [0], [0], [1], [0, 0, 1, 1], [], []>} : vector<152x128xbf16>, vector<128x128xbf16>, vector<152x128xf32> -> vector<152x128xf32>
    %c0_31 = arith.constant 0 : index
    %c0_32 = arith.constant 0 : index
    %40 = vector.load %arg12[%c0_31, %c0_32] : memref<1x128xf32, #tpu.memory_space<vmem>>, vector<1x128xf32>
    %41 = vector.broadcast %40 : vector<1x128xf32> to vector<152x128xf32>
    %42 = arith.addf %39, %41 : vector<152x128xf32>
    %cst_33 = arith.constant 0.000000e+00 : f32
    %43 = vector.broadcast %cst_33 : f32 to vector<152x128xf32>
    %44 = arith.maximumf %42, %43 : vector<152x128xf32>
    %45 = arith.truncf %44 : vector<152x128xf32> to vector<152x128xbf16>
    %c0_34 = arith.constant 0 : index
    %c0_35 = arith.constant 0 : index
    %46 = vector.load %arg13[%c0_34, %c0_35] : memref<128x128xbf16, #tpu.memory_space<vmem>>, vector<128x128xbf16>
    %cst_36 = arith.constant dense<0.000000e+00> : vector<152x128xf32>
    %47 = tpu.matmul %45, %46, %cst_36 {dimension_numbers = #tpu.dot_dimension_numbers<[1], [0], [0], [1], [0, 0, 1, 1], [], []>} : vector<152x128xbf16>, vector<128x128xbf16>, vector<152x128xf32> -> vector<152x128xf32>
    %c0_37 = arith.constant 0 : index
    %c0_38 = arith.constant 0 : index
    %48 = vector.load %arg14[%c0_37, %c0_38] : memref<1x128xf32, #tpu.memory_space<vmem>>, vector<1x128xf32>
    %49 = vector.broadcast %48 : vector<1x128xf32> to vector<152x128xf32>
    %50 = arith.addf %47, %49 : vector<152x128xf32>
    %51 = arith.truncf %50 : vector<152x128xf32> to vector<152x128xbf16>
    %c0_39 = arith.constant 0 : index
    %c0_40 = arith.constant 0 : index
    %52 = vector.load %arg15[%c0_39, %c0_40] : memref<152x128xbf16, #tpu.memory_space<vmem>>, vector<152x128xbf16>
    tpu.vector_store %arg15[%c0_39, %c0_40], %51 {strides = array<i32>} : memref<152x128xbf16, #tpu.memory_space<vmem>>, vector<152x128xbf16>,
    return
  }
  func.func @transform_0(%arg0: i32) -> (i32, i32) {
    %c0_i32 = arith.constant 0 : i32
    %c0_i32_0 = arith.constant 0 : i32
    return %arg0, %c0_i32 : i32, i32
  }
  func.func @transform_1(%arg0: i32) -> (i32, i32) {
    %c0_i32 = arith.constant 0 : i32
    %c0_i32_0 = arith.constant 0 : i32
    %c0_i32_1 = arith.constant 0 : i32
    return %c0_i32, %c0_i32_0 : i32, i32
  }
  func.func @transform_2(%arg0: i32) -> (i32, i32) {
    %c0_i32 = arith.constant 0 : i32
    %c0_i32_0 = arith.constant 0 : i32
    %c0_i32_1 = arith.constant 0 : i32
    return %c0_i32, %c0_i32_0 : i32, i32
  }
  func.func @transform_3(%arg0: i32) -> (i32, i32) {
    %c0_i32 = arith.constant 0 : i32
    %c0_i32_0 = arith.constant 0 : i32
    %c0_i32_1 = arith.constant 0 : i32
    return %c0_i32, %c0_i32_0 : i32, i32
  }
  func.func @transform_4(%arg0: i32) -> (i32, i32) {
    %c0_i32 = arith.constant 0 : i32
    %c0_i32_0 = arith.constant 0 : i32
    %c0_i32_1 = arith.constant 0 : i32
    return %c0_i32, %c0_i32_0 : i32, i32
  }
  func.func @transform_5(%arg0: i32) -> (i32, i32) {
    %c0_i32 = arith.constant 0 : i32
    %c0_i32_0 = arith.constant 0 : i32
    %c0_i32_1 = arith.constant 0 : i32
    return %c0_i32, %c0_i32_0 : i32, i32
  }
  func.func @transform_6(%arg0: i32) -> (i32, i32) {
    %c0_i32 = arith.constant 0 : i32
    %c0_i32_0 = arith.constant 0 : i32
    %c0_i32_1 = arith.constant 0 : i32
    return %c0_i32, %c0_i32_0 : i32, i32
  }
  func.func @transform_7(%arg0: i32) -> (i32, i32) {
    %c0_i32 = arith.constant 0 : i32
    %c0_i32_0 = arith.constant 0 : i32
    %c0_i32_1 = arith.constant 0 : i32
    return %c0_i32, %c0_i32_0 : i32, i32
  }
  func.func @transform_8(%arg0: i32) -> (i32, i32) {
    %c0_i32 = arith.constant 0 : i32
    %c0_i32_0 = arith.constant 0 : i32
    %c0_i32_1 = arith.constant 0 : i32
    return %c0_i32, %c0_i32_0 : i32, i32
  }
  func.func @transform_9(%arg0: i32) -> (i32, i32) {
    %c0_i32 = arith.constant 0 : i32
    %c0_i32_0 = arith.constant 0 : i32
    %c0_i32_1 = arith.constant 0 : i32
    return %c0_i32, %c0_i32_0 : i32, i32
  }
  func.func @transform_10(%arg0: i32) -> (i32, i32) {
    %c0_i32 = arith.constant 0 : i32
    %c0_i32_0 = arith.constant 0 : i32
    %c0_i32_1 = arith.constant 0 : i32
    return %c0_i32, %c0_i32_0 : i32, i32
  }
  func.func @transform_11(%arg0: i32) -> (i32, i32) {
    %c0_i32 = arith.constant 0 : i32
    %c0_i32_0 = arith.constant 0 : i32
    %c0_i32_1 = arith.constant 0 : i32
    return %c0_i32, %c0_i32_0 : i32, i32
  }
  func.func @transform_12(%arg0: i32) -> (i32, i32) {
    %c0_i32 = arith.constant 0 : i32
    %c0_i32_0 = arith.constant 0 : i32
    %c0_i32_1 = arith.constant 0 : i32
    return %c0_i32, %c0_i32_0 : i32, i32
  }
  func.func @transform_13(%arg0: i32) -> (i32, i32) {
    %c0_i32 = arith.constant 0 : i32
    %c0_i32_0 = arith.constant 0 : i32
    %c0_i32_1 = arith.constant 0 : i32
    return %c0_i32, %c0_i32_0 : i32, i32
  }
  func.func @transform_14(%arg0: i32) -> (i32, i32) {
    %c0_i32 = arith.constant 0 : i32
    %c0_i32_0 = arith.constant 0 : i32
    return %arg0, %c0_i32 : i32, i32
  }
}

</mosaic_0001>

<bundles_post_ra>
// kernel: tpu_custom_call.1
= control target key start
LH: loop header
LB: loop body
LE: loop exit
PB: predicated region body
PF: predicated region fallthrough
CT: control target
= control target key end

     0   :  { %s3660_s0 = inlined_call_operand.vmem [shape: bf16[304,16], index: 0, kind: input, shape index: {}]   ;;  %s3661_s1 = inlined_call_operand.hbm [shape: bf16[16,128], index: 1, kind: input, shape index: {}]   ;;  %s3662_s2 = inlined_call_operand.vmem [shape: bf16[128,128], index: 2, kind: input, shape index: {}]   ;;  %s3663_s3 = inlined_call_operand.vmem [shape: f32[1,128], index: 3, kind: input, shape index: {}]   ;;  %s3664_s4 = inlined_call_operand.vmem [shape: bf16[128,128], index: 4, kind: input, shape index: {}]   ;;  %s3665_s5 = inlined_call_operand.vmem [shape: f32[1,128], index: 5, kind: input, shape index: {}]   ;;  %s3666_s6 = inlined_call_operand.vmem [shape: bf16[128,128], index: 6, kind: input, shape index: {}]   ;;  %s3667_s7 = inlined_call_operand.vmem [shape: f32[1,128], index: 7, kind: input, shape index: {}]   ;;  %s3668_s8 = inlined_call_operand.hbm [shape: bf16[128,128], index: 8, kind: input, shape index: {}]   ;;  %s3669_s9 = inlined_call_operand.vmem [shape: f32[1,128], index: 9, kind: input, shape index: {}]   ;;  %s3670_s10 = inlined_call_operand.hbm [shape: bf16[128,128], index: 10, kind: input, shape index: {}]   ;;  %s3671_s11 = inlined_call_operand.vmem [shape: f32[1,128], index: 11, kind: input, shape index: {}]   ;;  %s3672_s12 = inlined_call_operand.hbm [shape: bf16[128,128], index: 12, kind: input, shape index: {}]   ;;  %s3673_s13 = inlined_call_operand.vmem [shape: f32[1,128], index: 13, kind: input, shape index: {}]   ;;  %s3674_s14 = inlined_call_operand.hbm [shape: bf16[304,128], index: 14, kind: output, shape index: {}]  }
   0x1   :  { %3689 = sst [smem:[#allocation23_spill]] %s3673_s13 }
   0x2   :  { %3690 = sst [smem:[#allocation24_spill]] %s3674_s14 }
   0x3   :  { %19 = vsyncpa [#allocation3], 0 }
   0x4   :  { %20 = vsyncpa [#allocation6], 0 }
   0x5   :  { %21 = vsyncpa [#allocation9], 0 }
   0x6   :  { %22 = vsyncpa [#allocation4], 0 }
   0x7   :  { %24 = vsyncpa [#allocation4 + $0x1], 0  ;;  %s3190_s29 = smov 0   ;;  %s3192_s30 = smov 0  }
   0x8   :  { %s3194_s15 = smov 0   ;;  %s3196_s16 = smov 0  }
   0x9 LB: > { %3691 = sst [smem:[#allocation15_spill]] %s3092_s29  ;;  %s3211_s17 = sadd.s32 4294967295, %s3104_s16   ;;  %s3104_s16 = sphi %s3196_s16, %s3720_s16   ;;  %s3100_s15 = sphi %s3194_s15, %s3723_s15   ;;  %s3096_s30 = sphi %s3192_s30, %s3722_s30   ;;  %s3092_s29 = sphi %s3190_s29, %s3721_s29  }
   0xa   : > { %3692 = sst [smem:[#allocation16_spill]] %s3096_s30  ;;  %s2232_s18 = sadd.s32 4294967294, %s3104_s16  }
   0xb   : > { %3693 = sst [smem:[#allocation17_spill]] %s3100_s15  ;;  %s3215_s19 = sadd.s32 1, %s3104_s16  }
   0xc   : > { %3694 = sst [smem:[#allocation18_spill]] %s3104_s16  ;;  %s336_s20 = sadd.s32 1, %s3100_s15 }
   0xd   : > { %3695 = sst [smem:[#allocation19_spill]] %s3215_s19  ;;  %s333_s21 = ssub.s32 %s3104_s16, %s3215_s19 }
   0xe   : > { %p346_p0 = scmp.ne.s32.totalorder %s3100_s15, %s3096_s30  ;;  %p334_p1 = scmp.eq.s32.totalorder %s333_s21, 0 }
   0xf   : > { %p347_p2 = scmp.eq.s32.totalorder %s3211_s17, 1  ;;  %p352_p3 = scmp.ne.s32.totalorder %s3096_s30, %s3092_s29 }
  0x10   : > { %p353_p4 = scmp.eq.s32.totalorder %s2232_s18, 1  ;;  %p2233_p7 = scmp.ge.s32.totalorder %s3104_s16, 1 }
  0x11   : > { %s3226_s22 = scalar_select %p334_p1, %s3100_s15, %s336_s20  }
  0x12   : > { %p3228_p5 = por %p347_p2, %p346_p0  ;;  %p3232_p6 = por %p353_p4, %p352_p3 }
  0x13   : > { %3696 = sst [smem:[#allocation20_spill]] %s3226_s22  ;;  %p360_p8 = scmp.lt.s32.totalorder %s3104_s16, 3 }
  0x14   : > { %s3697_s23 = scalar_select %p3228_p5, 1, 0 }
  0x15   : > { %s3699_s24 = scalar_select %p3232_p6, 1, 0 }
  0x16   : > { %3698 = sst [smem:[#allocation21_spill]] %s3697_s23  ;;  %p3681_p9 = scmp.eq.s32.totalorder %s3211_s17, 0 }
  0x17   : > { %3700 = sst [smem:[#allocation22_spill]] %s3699_s24  ;;  %p3239_p10 = pnand %p2233_p7, %p360_p8 }
  0x18   : > { %s3106_s26 = smov [#allocation5]   ;;  %s3107_s18 = smov [#allocation2]  }
  0x19   : > { %s3701_s25 = scalar_select %p3239_p10, 1, 0 }
  0x1a   : > { %p2793_p11 = pneg %p3239_p10  ;;  %s403_s27 = sshll.u32 %s3106_s26, 4  ;;  %s3245_s27 = int_to_ptr.vmem [resolvable:$true] %s403_s27 }
  0x1b   : > { %s372_s20 = sshll.u32 %s3107_s18, 4  ;;  %s3108_s21 = smov [#allocation7]   ;;  %s3253_s20 = int_to_ptr.vmem [resolvable:$true] %s372_s20 }
  0x1c   : > { %p3249_p12 = pnand %p3681_p9, %p2793_p11  ;;  %s3255_s22 = sshll.u32 %s3108_s21, 4  ;;  %s420_s22 = int_to_ptr.vmem [resolvable:$true] %s3255_s22 }
  0x1d   : > { %s2918_s24 = scalar_lea.hbm %s3668_s8, 1024 }
  0x1e   : > { %p2919_p13 = scmp.ne.s32.totalorder %s3668_s8, %s2918_s24  ;;  %p3265_p0 = pneg %p3249_p12 }
  0x1f   : > { %p2925_p3 = scmp.lt.u32.totalorder %s2918_s24, %s3668_s8 }
  0x20   : > { %p2921_p1 = pnand %p3265_p0, %p2919_p13 }
  0x22   : > { %p2922_p2 = pneg %p2921_p1 }
  0x24   : > { %p2927_p4 = pnand %p2925_p3, %p2922_p2 }
  0x26   : > { %2930 = shalt.err (!%p2927_p4)
}
  0x27   : > { %s2931_s29 = scalar_lea.vmem %s3245_s27, 1024  ;;  %p2939_p9 = scmp.lt.s32.totalorder %s3245_s27, %s3245_s27 }
  0x28   : > { %p2932_p7 = scmp.ne.s32.totalorder %s3245_s27, %s2931_s29  ;;  %p2940_p6 = scmp.lt.s32.totalorder %s2931_s29, %s2931_s29 }
  0x2a   : > { %p2934_p8 = pnand %p2932_p7, %p3265_p0  ;;  %p2941_p13 = por %p2940_p6, %p2939_p9 }
  0x2c   : > { %p2935_p11 = pneg %p2934_p8 }
  0x2e   : > { %p2942_p1 = pnand %p2941_p13, %p2935_p11 }
  0x30   : > { %2945 = shalt.err (!%p2942_p1)
}
  0x31   : > { %s3109_s15 = smov 64   ;;  %s3110_s19 = smov 4  }
  0x32   : > { %2799 = dma.hbm_to_vmem [thread:$0]  (!%p3249_p12), %s3668_s8, 1024, %s3245_s27, [#allocation6], %s3109_s15, %s3109_s15, %s3110_s19  }
  0x33   : > { %s2946_s29 = scalar_lea.hbm %s3661_s1, 128 }
  0x34   : > { %p2947_p6 = scmp.ne.s32.totalorder %s3661_s1, %s2946_s29  ;;  %p2953_p3 = scmp.lt.u32.totalorder %s2946_s29, %s3661_s1 }
  0x36   : > { %p2949_p9 = pnand %p2947_p6, %p3265_p0 }
  0x38   : > { %p2950_p2 = pneg %p2949_p9 }
  0x3a   : > { %p2955_p4 = pnand %p2953_p3, %p2950_p2 }
  0x3c   : > { %2958 = shalt.err (!%p2955_p4)
}
  0x3d   : > { %s2959_s27 = scalar_lea.vmem %s3253_s20, 128  ;;  %p2967_p13 = scmp.lt.s32.totalorder %s3253_s20, %s3253_s20 }
  0x3e   : > { %p2960_p7 = scmp.ne.s32.totalorder %s3253_s20, %s2959_s27  ;;  %p2968_p1 = scmp.lt.s32.totalorder %s2959_s27, %s2959_s27 }
  0x40   : > { %p2962_p8 = pnand %p2960_p7, %p3265_p0  ;;  %p2969_p6 = por %p2968_p1, %p2967_p13 }
  0x42   : > { %p2963_p11 = pneg %p2962_p8 }
  0x44   : > { %p2970_p9 = pnand %p2969_p6, %p2963_p11 }
  0x46   : > { %2973 = shalt.err (!%p2970_p9)
}
  0x47   : > { %2796 = dma.hbm_to_vmem [thread:$0]  (!%p3249_p12), %s3661_s1, 128, %s3253_s20, [#allocation3], %s3109_s15, %s3109_s15, %s3110_s19  }
  0x48   : > { %s2974_s24 = scalar_lea.hbm %s3670_s10, 1024 }
  0x49   : > { %p2975_p2 = scmp.ne.s32.totalorder %s3670_s10, %s2974_s24  ;;  %p2981_p7 = scmp.lt.u32.totalorder %s2974_s24, %s3670_s10 }
  0x4b   : > { %p2977_p3 = pnand %p2975_p2, %p3265_p0 }
  0x4d   : > { %p2978_p4 = pneg %p2977_p3 }
  0x4f   : > { %p2983_p8 = pnand %p2981_p7, %p2978_p4 }
  0x51   : > { %2986 = shalt.err (!%p2983_p8)
}
  0x52   : > { %s2987_s27 = scalar_lea.vmem %s420_s22, 1024  ;;  %p2995_p6 = scmp.lt.s32.totalorder %s420_s22, %s420_s22 }
  0x53   : > { %p2988_p11 = scmp.ne.s32.totalorder %s420_s22, %s2987_s27  ;;  %p2996_p9 = scmp.lt.s32.totalorder %s2987_s27, %s2987_s27 }
  0x55   : > { %p2990_p13 = pnand %p2988_p11, %p3265_p0  ;;  %p2997_p5 = por %p2996_p9, %p2995_p6 }
  0x57   : > { %p2991_p1 = pneg %p2990_p13 }
  0x59   : > { %p2998_p10 = pnand %p2997_p5, %p2991_p1 }
  0x5b   : > { %3001 = shalt.err (!%p2998_p10)
}
  0x5c   : > { %2802 = dma.hbm_to_vmem [thread:$0]  (!%p3249_p12), %s3670_s10, 1024, %s420_s22, [#allocation6], %s3109_s15, %s3109_s15, %s3110_s19  }
  0x5d   : > { %s3111_s14 = smov [#allocation8]   ;;  %s3002_s26 = scalar_lea.hbm %s3672_s12, 1024 }
  0x5e   : > { %s435_s30 = sshll.u32 %s3111_s14, 4  ;;  %p3003_p5 = scmp.ne.s32.totalorder %s3672_s12, %s3002_s26  ;;  %s436_s30 = int_to_ptr.vmem [resolvable:$true] %s435_s30 }
  0x5f   : > { %p3009_p3 = scmp.lt.u32.totalorder %s3002_s26, %s3672_s12 }
  0x60   : > { %p3005_p10 = pnand %p3003_p5, %p3265_p0 }
  0x62   : > { %p3006_p2 = pneg %p3005_p10 }
  0x64   : > { %p3011_p4 = pnand %p3009_p3, %p3006_p2 }
  0x66   : > { %3014 = shalt.err (!%p3011_p4)
}
  0x67   : > { %s3015_s22 = scalar_lea.vmem %s436_s30, 1024  ;;  %p3023_p13 = scmp.lt.s32.totalorder %s436_s30, %s436_s30 }
  0x68   : > { %p3016_p7 = scmp.ne.s32.totalorder %s436_s30, %s3015_s22  ;;  %p3024_p1 = scmp.lt.s32.totalorder %s3015_s22, %s3015_s22 }
  0x6a   : > { %p3018_p8 = pnand %p3016_p7, %p3265_p0  ;;  %p3025_p6 = por %p3024_p1, %p3023_p13 }
  0x6c   : > { %p3019_p11 = pneg %p3018_p8 }
  0x6e   : > { %p3026_p9 = pnand %p3025_p6, %p3019_p11 }
  0x70   : > { %3029 = shalt.err (!%p3026_p9)
}
  0x71   : > { %2805 = dma.hbm_to_vmem [thread:$0]  (!%p3249_p12), %s3672_s12, 1024, %s436_s30, [#allocation9], %s3109_s15, %s3109_s15, %s3110_s19  }
  0x72   : > { %p3704_p5 = scmp.ne.s32.totalorder %s3701_s25, 0 }
  0x73   : > { %p3705_p0 = scmp.eq.s32.totalorder (!%p3704_p5), %s3211_s17, 0 }
  0x74   : > { %463 = sbr.rel (%p3704_p5) target bundleno = 1735 (0x6c7), region = 76 }
  0x7b   : > { %3075 = dma.done.wait (%p3705_p0), [#allocation3], 128   ;;  %p3706_p10 = pmov %p3705_p0 }
  0x7c   : > { %p3707_p2 = pmov %p3705_p0 }
  0x7d   : > { %3077 = vsyncadd (%p3706_p10), [#allocation3], 4294967168 }
  0x7e   : > { %3079 = dma.done.wait (%p3707_p2), [#allocation6], 2048   ;;  %p3708_p3 = pmov %p3705_p0 }
  0x7f   : > { %p3709_p4 = pmov %p3705_p0 }
  0x80   : > { %3081 = vsyncadd (%p3708_p3), [#allocation6], 4294965248 }
  0x81   : > { %3083 = dma.done.wait (%p3709_p4), [#allocation9], 1024   ;;  %p3710_p12 = pmov %p3705_p0 }
  0x82   : > { %s521_s16 = smul.u32 19, %s3211_s17  ;;  %v2859_v0 = vld [vmem:[#allocation2] sm:$0xff]   ;;  %vm604_vm0 = vcmask 130048   ;;  %v2871_v9 = vld [vmem:[%s3662_s2 + $0x8] sm:$0xff]   ;;  %v2872_v10 = vld [vmem:[%s3662_s2 + $0x10] sm:$0xff]   ;;  %s3711_s29 = sld [smem:[#allocation16_spill]] }
  0x83   : > { %3085 = vsyncadd (%p3710_p12), [#allocation9], 4294966272  ;;  %2534 = vmatprep.subr.bf16.mxu0 %v2859_v0  ;;  %2772 = vmatprep.subr.bf16.mxu1 %v2859_v0  ;;  %v2870_v8 = vld [vmem:[%s3662_s2] sm:$0xff]   ;;  %v2873_v13 = vld [vmem:[%s3662_s2 + $0x18] sm:$0xff]   ;;  %s3712_s13 = sld [smem:[#allocation23_spill]]  ;;  %s2361_s15 = smul.u32 1216, %s3211_s17 }
  0x84   : > { %p522_p7 = scmp.lt.s32.totalorder %s521_s16, 37  ;;  %2535 = vmatpush3.bf16.msra.mxu0 %v2859_v0  ;;  %2773 = vmatpush3.bf16.msra.mxu1 %v2859_v0  ;;  %v2874_v14 = vld [vmem:[%s3662_s2 + $0x20] sm:$0xff]   ;;  %v2875_v16 = vld [vmem:[%s3662_s2 + $0x28] sm:$0xff]   ;;  %v2876_v17 = vld [vmem:[%s3662_s2 + $0x30] sm:$0xff]   ;;  %s3713_s28 = sld [smem:[#allocation21_spill]] }
  0x85   : > { %2556 = vmatprep.subr.bf16.mxu1 %v2870_v8  ;;  %v2877_v18 = vld [vmem:[%s3662_s2 + $0x38] sm:$0xff]   ;;  %v2878_v19 = vld [vmem:[%s3664_s4] sm:$0xff]   ;;  %v2879_v20 = vld [vmem:[%s3664_s4 + $0x8] sm:$0xff]   ;;  %s3714_s23 = sld [smem:[#allocation24_spill]]  ;;  %s3112_s18 = smov [#allocation10]  }
  0x86   : > { %s3725_s16 = smov (!%p522_p7, %s521_s16), 37  ;;  %2592 = vmatprep.subr.bf16.mxu0 %v2878_v19  ;;  %v2880_v21 = vld [vmem:[%s3664_s4 + $0x10] sm:$0xff]   ;;  %v2881_v22 = vld [vmem:[%s3664_s4 + $0x18] sm:$0xff]   ;;  %v2882_v23 = vld [vmem:[%s3664_s4 + $0x20] sm:$0xff]   ;;  %s3034_s21 = sshll.u32 %s3112_s18, 4  ;;  %s3035_s21 = int_to_ptr.vmem [resolvable:$false] %s3034_s21 }
  0x87   : > { %s2244_s25 = sshll.u32 %s3725_s16, 2  ;;  %v2883_v24 = vld [vmem:[%s3664_s4 + $0x28] sm:$0xff]   ;;  %s3036_s22 = scalar_lea.vmem %s3035_s21, 2432 }
  0x88   : > { %s3376_s19 = scalar_lea.vmem %s3660_s0, %s2244_s25  ;;  %s518_s27 = sand.u32 1, %s3711_s29  }
  0x89   : > { %v2860_v1 = vld [vmem:[%s3376_s19] sm:$0xff]   ;;  %v2861_v2 = vld [vmem:[%s3376_s19 + $0x8] sm:$0xff]   ;;  %v2862_v3 = vld [vmem:[%s3376_s19 + $0x10] sm:$0xff]   ;;  %s2774_s16 = smul.u32 76, %s518_s27  ;;  %s3619_s17 = scalar_lea.sflag [#allocation4], %s518_s27 }
  0x8a   : > { %2536 = vmatprep.mubr.msk.bf16.mxu0 %vm604_vm0, %v2860_v1  ;;  %v2863_v4 = vld [vmem:[%s3376_s19 + $0x18] sm:$0xff]   ;;  %v2864_v5 = vld [vmem:[%s3376_s19 + $0x20] sm:$0xff]   ;;  %v2869_v7 = vld [vmem:[%s3376_s19 + $0x48] ss:$0 sps:$4 sm:$0xff]   ;;  %p3715_p11 = scmp.ne.s32.totalorder %s3713_s28, 0 }
  0x8b   : > { %2537 = vmatmul.mubr.msk.bf16.vlgmr.msra.gmra.mrb[0].mxu0 %vm604_vm0, %v2861_v2  ;;  %v2868_v6 = vld [vmem:[%s3376_s19 + $0x40] sm:$0xff]   ;;  %v2865_v11 = vld [vmem:[%s3376_s19 + $0x28] sm:$0xff]   ;;  %v2866_v12 = vld [vmem:[%s3376_s19 + $0x30] sm:$0xff]   ;;  %s3596_s25 = scalar_lea.vmem [#allocation10], %s2774_s16  ;;  %s3612_s24 = scalar_lea.hbm %s3714_s23, %s2361_s15 }
  0x8c   : > { %2540 = vmatprep.mubr.msk.bf16.mxu0 %vm604_vm0, %v2862_v3  ;;  %2552 = vmatprep.mubr.msk.bf16.mxu1 %vm604_vm0, %v2868_v6  ;;  %v2867_v15 = vld [vmem:[%s3376_s19 + $0x38] sm:$0xff]   ;;  %s2129_s19 = sshll.u32 %s3596_s25, 4  ;;  %s3614_s19 = int_to_ptr.vmem [resolvable:$true] %s2129_s19 }
  0x8d   : > { %2553 = vmatmul.mubr.msk.bf16.vlgmr.msra.gmra.mrb[0].mxu1 %vm604_vm0, %v2869_v7  ;;  %2593 = vmatpush3.bf16.msra.mxu0 %v2878_v19  ;;  %s3030_s26 = scalar_lea.vmem %s3614_s19, 1216  ;;  %p3037_p6 = scmp.lt.s32.totalorder %s3614_s19, %s3035_s21 }
  0x8e   : > { %2557 = vmatpush3.bf16.msra.mxu1 %v2870_v8  ;;  %2594 = vmatprep.subr.bf16.mxu0 %v2879_v20  ;;  %p3031_p8 = scmp.ne.s32.totalorder %s3614_s19, %s3030_s26  ;;  %p3038_p9 = scmp.lt.s32.totalorder %s3036_s22, %s3030_s26 }
  0x8f   : > { %2558 = vmatprep.subr.bf16.mxu1 %v2871_v9 }
  0x90   : > { %p3032_p13 = pnand %p3031_p8, %p3715_p11  ;;  %p3039_p5 = por %p3038_p9, %p3037_p6 }
  0x91   : > { %2595 = vmatpush3.bf16.msra.mxu0 %v2879_v20 }
  0x92   : > { %2559 = vmatpush3.bf16.msra.mxu1 %v2871_v9  ;;  %2596 = vmatprep.subr.bf16.mxu0 %v2880_v21  ;;  %p3033_p1 = pneg %p3032_p13 }
  0x93   : > { %2541 = vmatmul.mubr.msk.bf16.gmra.mrb[4].mxu0 %vm604_vm0, %v2863_v4  ;;  %2560 = vmatprep.subr.bf16.mxu1 %v2872_v10 }
  0x94   : > { %2544 = vmatprep.mubr.msk.bf16.mxu0 %vm604_vm0, %v2864_v5  ;;  %p3040_p0 = pnand %p3039_p5, %p3033_p1 }
  0x95   : > { %2597 = vmatpush3.bf16.msra.mxu0 %v2880_v21 }
  0x96   : > { %2561 = vmatpush3.bf16.msra.mxu1 %v2872_v10  ;;  %2598 = vmatprep.subr.bf16.mxu0 %v2881_v22  ;;  %v2884_v10 = vld [vmem:[%s3664_s4 + $0x30] sm:$0xff]  }
  0x97   : > { %2562 = vmatprep.subr.bf16.mxu1 %v2873_v13 }
  0x99   : > { %2599 = vmatpush3.bf16.msra.mxu0 %v2881_v22 }
  0x9a   : > { %2563 = vmatpush3.bf16.msra.mxu1 %v2873_v13  ;;  %2600 = vmatprep.subr.bf16.mxu0 %v2882_v23  ;;  %v2887_v13 = vld [vmem:[%s3666_s6 + $0x8] sm:$0xff]  }
  0x9b   : > { %2545 = vmatmul.mubr.msk.bf16.gmra.mrb[8].mxu0 %vm604_vm0, %v2865_v11  ;;  %2564 = vmatprep.subr.bf16.mxu1 %v2874_v14  ;;  %v2885_v11 = vld [vmem:[%s3664_s4 + $0x38] sm:$0xff]  }
  0x9c   : > { %2548 = vmatprep.mubr.msk.bf16.mxu0 %vm604_vm0, %v2866_v12  ;;  %v2886_v12 = vld [vmem:[%s3666_s6] sm:$0xff]  }
  0x9d   : > { %2601 = vmatpush3.bf16.msra.mxu0 %v2882_v23 }
  0x9e   : > { %2565 = vmatpush3.bf16.msra.mxu1 %v2874_v14  ;;  %2602 = vmatprep.subr.bf16.mxu0 %v2883_v24  ;;  %v2888_v14 = vld [vmem:[%s3666_s6 + $0x10] sm:$0xff]  }
  0x9f   : > { %2566 = vmatprep.subr.bf16.mxu1 %v2875_v16 }
  0xa1   : > { %2603 = vmatpush3.bf16.msra.mxu0 %v2883_v24 }
  0xa2   : > { %2567 = vmatpush3.bf16.msra.mxu1 %v2875_v16  ;;  %2604 = vmatprep.subr.bf16.mxu0 %v2884_v10  ;;  %v2890_v16 = vld [vmem:[%s3666_s6 + $0x20] sm:$0xff]  }
  0xa3   : > { %2549 = vmatmul.mubr.msk.bf16.gmra.mrb[12].mxu0 %vm604_vm0, %v2867_v15  ;;  %2568 = vmatprep.subr.bf16.mxu1 %v2876_v17  ;;  %v2889_v15 = vld [vmem:[%s3666_s6 + $0x18] sm:$0xff]  }
  0xa5   : > { %2605 = vmatpush3.bf16.msra.mxu0 %v2884_v10 }
  0xa6   : > { %2569 = vmatpush3.bf16.msra.mxu1 %v2876_v17  ;;  %2606 = vmatprep.subr.bf16.mxu0 %v2885_v11  ;;  %v2891_v17 = vld [vmem:[%s3666_s6 + $0x28] sm:$0xff]  }
  0xa7   : > { %2570 = vmatprep.subr.bf16.mxu1 %v2877_v18 }
  0xa9   : > { %2607 = vmatpush3.bf16.msra.mxu0 %v2885_v11 }
  0xaa   : > { %2571 = vmatpush3.bf16.msra.mxu1 %v2877_v18  ;;  %v3467_v18 = vld [vmem:[%s3663_s3] ss:$0 sm:$0xff] }
  0xab   : > { %2628 = vmatprep.subr.bf16.mxu1 %v2886_v12 }
 0x15e   : > { %v2538_v25 = vpop.f32.mrb[0].mxu0 }
 0x15f   : > { %v669_v26 = vpop.f32.mrb[1].mxu0  ;;  %v749_v28 = vmax.f32 %v2538_v25, 0.0 }
 0x160   : > { %v2539_v27 = vpop.f32.mrb[2].mxu0  ;;  %v747_v31 = vmax.f32 %v669_v26, 0.0  ;;  %v2554_v35 = vpop.f32.mrb[0].mxu1 }
 0x161   : > { %v750_v29 = vmax.f32 %v2539_v27, 0.0  ;;  %v672_v30 = vpop.f32.mrb[3].mxu0  ;;  %v733_v36 = vpop.f32.mrb[1].mxu1  ;;  %v765_v8 = vmax.f32 %v2554_v35, 0.0 }
 0x162   : > { %v748_v32 = vmax.f32 %v672_v30, 0.0  ;;  %v763_v38 = vmax.f32 %v733_v36, 0.0  ;;  %v2555_v39 = vpop.f32.mrb[2].mxu1 }
 0x163   : > { %v767_v33 = vpack.c.bf16 %v750_v29, %v749_v28  ;;  %v736_v41 = vpop.f32.mrb[3].mxu1  ;;  %v775_v9 = vpack.c.bf16 %v765_v8, %v765_v8 }
 0x164   : > { %v766_v34 = vpack.c.bf16 %v748_v32, %v747_v31  ;;  %v764_v43 = vmax.f32 %v736_v41, 0.0 }
 0x166   : > { %v2542_v37 = vpop.f32.mrb[4].mxu0  ;;  %2572 = vmatprep.mubr.bf16.mxu1 %v766_v34  ;;  %v774_v49 = vpack.c.bf16 %v764_v43, %v763_v38 }
 0x167   : > { %v685_v40 = vpop.f32.mrb[5].mxu0  ;;  %2573 = vmatmul.mubr.bf16.vlgmr.msra.gmra.mrb[4].mxu1 %v767_v33  ;;  %v753_v44 = vmax.f32 %v2542_v37, 0.0 }
 0x168   : > { %v2543_v42 = vpop.f32.mrb[6].mxu0  ;;  %v751_v47 = vmax.f32 %v685_v40, 0.0  ;;  %2629 = vmatpush3.bf16.msra.mxu1 %v2886_v12 }
 0x169   : > { %v754_v45 = vmax.f32 %v2543_v42, 0.0  ;;  %v688_v46 = vpop.f32.mrb[7].mxu0  ;;  %2630 = vmatprep.subr.bf16.mxu1 %v2887_v13 }
 0x16a   : > { %v752_v48 = vmax.f32 %v688_v46, 0.0 }
 0x16b   : > { %v769_v50 = vpack.c.bf16 %v754_v45, %v753_v44 }
 0x16c   : > { %v768_v51 = vpack.c.bf16 %v752_v48, %v751_v47  ;;  %2631 = vmatpush3.bf16.msra.mxu1 %v2887_v13 }
 0x16d   : > { %2632 = vmatprep.subr.bf16.mxu1 %v2888_v14 }
 0x16e   : > { %v2546_v52 = vpop.f32.mrb[8].mxu0  ;;  %2576 = vmatprep.mubr.bf16.mxu1 %v768_v51 }
 0x16f   : > { %v701_v53 = vpop.f32.mrb[9].mxu0  ;;  %2577 = vmatmul.mubr.bf16.gmra.mrb[8].mxu1 %v769_v50  ;;  %v757_v55 = vmax.f32 %v2546_v52, 0.0 }
 0x170   : > { %v2547_v54 = vpop.f32.mrb[10].mxu0  ;;  %v755_v58 = vmax.f32 %v701_v53, 0.0  ;;  %2633 = vmatpush3.bf16.msra.mxu1 %v2888_v14 }
 0x171   : > { %v758_v56 = vmax.f32 %v2547_v54, 0.0  ;;  %v704_v57 = vpop.f32.mrb[11].mxu0  ;;  %2634 = vmatprep.subr.bf16.mxu1 %v2889_v15 }
 0x172   : > { %v756_v59 = vmax.f32 %v704_v57, 0.0 }
 0x173   : > { %v771_v60 = vpack.c.bf16 %v758_v56, %v757_v55 }
 0x174   : > { %v770_v61 = vpack.c.bf16 %v756_v59, %v755_v58  ;;  %2635 = vmatpush3.bf16.msra.mxu1 %v2889_v15 }
 0x175   : > { %2636 = vmatprep.subr.bf16.mxu1 %v2890_v16 }
 0x176   : > { %v2550_v62 = vpop.f32.mrb[12].mxu0  ;;  %2580 = vmatprep.mubr.bf16.mxu1 %v770_v61 }
 0x177   : > { %v717_v63 = vpop.f32.mrb[13].mxu0  ;;  %2581 = vmatmul.mubr.bf16.gmra.mrb[12].mxu1 %v771_v60  ;;  %v761_v1 = vmax.f32 %v2550_v62, 0.0 }
 0x178   : > { %v2551_v0 = vpop.f32.mrb[14].mxu0  ;;  %v759_v4 = vmax.f32 %v717_v63, 0.0  ;;  %2637 = vmatpush3.bf16.msra.mxu1 %v2890_v16 }
 0x179   : > { %v762_v2 = vmax.f32 %v2551_v0, 0.0  ;;  %v720_v3 = vpop.f32.mrb[15].mxu0  ;;  %2638 = vmatprep.subr.bf16.mxu1 %v2891_v17 }
 0x17a   : > { %v760_v5 = vmax.f32 %v720_v3, 0.0 }
 0x17b   : > { %v773_v6 = vpack.c.bf16 %v762_v2, %v761_v1 }
 0x17c   : > { %v772_v7 = vpack.c.bf16 %v760_v5, %v759_v4  ;;  %2639 = vmatpush3.bf16.msra.mxu1 %v2891_v17 }
 0x17e   : > { %2584 = vmatprep.mubr.bf16.mxu1 %v772_v7 }
 0x17f   : > { %2585 = vmatmul.mubr.bf16.gmra.mrb[16].mxu1 %v773_v6 }
 0x180   : > { %2588 = vmatprep.mubr.bf16.mxu1 %v774_v49 }
 0x187   : > { %2589 = vmatmul.mubr.bf16.gmra.mrb[20].mxu1 %v775_v9 }
 0x23a   : > { %v2574_v19 = vpop.f32.mrb[4].mxu1 }
 0x23b   : > { %v890_v20 = vadd.f32 %v2574_v19, %v3467_v18  ;;  %v881_v21 = vpop.f32.mrb[5].mxu1 }
 0x23c   : > { %v882_v22 = vadd.f32 %v3467_v18, %v881_v21  ;;  %v2575_v23 = vpop.f32.mrb[6].mxu1 }
 0x23d   : > { %v893_v24 = vadd.f32 %v2575_v23, %v3467_v18  ;;  %v884_v25 = vpop.f32.mrb[7].mxu1  ;;  %v961_v27 = vmax.f32 %v890_v20, 0.0 }
 0x23e   : > { %v885_v26 = vadd.f32 %v3467_v18, %v884_v25  ;;  %v959_v29 = vmax.f32 %v882_v22, 0.0  ;;  %v2893_v25 = vld [vmem:[%s3666_s6 + $0x38] sm:$0xff]  }
 0x23f   : > { %v962_v28 = vmax.f32 %v893_v24, 0.0  ;;  %v2892_v24 = vld [vmem:[%s3666_s6 + $0x30] sm:$0xff]  }
 0x240   : > { %v960_v30 = vmax.f32 %v885_v26, 0.0  ;;  %2640 = vmatprep.subr.bf16.mxu1 %v2892_v24  ;;  %v2895_v26 = vld [vmem:[#allocation5 + $0x8] sm:$0xff]  }
 0x241   : > { %v979_v31 = vpack.c.bf16 %v962_v28, %v961_v27  ;;  %2641 = vmatpush3.bf16.msra.mxu1 %v2892_v24  ;;  %v2896_v27 = vld [vmem:[#allocation5 + $0x10] sm:$0xff]   ;;  %v2897_v28 = vld [vmem:[#allocation5 + $0x18] sm:$0xff]  }
 0x242   : > { %v978_v32 = vpack.c.bf16 %v960_v30, %v959_v29  ;;  %v2578_v33 = vpop.f32.mrb[8].mxu1  ;;  %2642 = vmatprep.subr.bf16.mxu1 %v2893_v25  ;;  %v2898_v29 = vld [vmem:[#allocation5 + $0x20] sm:$0xff]   ;;  %v2899_v30 = vld [vmem:[#allocation5 + $0x28] sm:$0xff]  }
 0x243   : > { %v906_v34 = vadd.f32 %v2578_v33, %v3467_v18  ;;  %v897_v35 = vpop.f32.mrb[9].mxu1 }
 0x244   : > { %v898_v36 = vadd.f32 %v3467_v18, %v897_v35  ;;  %v2579_v37 = vpop.f32.mrb[10].mxu1  ;;  %2608 = vmatprep.mubr.bf16.mxu0 %v978_v32 }
 0x245   : > { %v909_v38 = vadd.f32 %v2579_v37, %v3467_v18  ;;  %v900_v39 = vpop.f32.mrb[11].mxu1  ;;  %2609 = vmatmul.mubr.bf16.vlgmr.msra.gmra.mrb[16].mxu0 %v979_v31  ;;  %v965_v41 = vmax.f32 %v906_v34, 0.0  ;;  %2643 = vmatpush3.bf16.msra.mxu1 %v2893_v25  ;;  %v3497_v31 = vld [vmem:[%s3665_s5] ss:$0 sm:$0xff] }
 0x246   : > { %v901_v40 = vadd.f32 %v3467_v18, %v900_v39  ;;  %v963_v43 = vmax.f32 %v898_v36, 0.0 }
 0x247   : > { %v966_v42 = vmax.f32 %v909_v38, 0.0 }
 0x248   : > { %v964_v44 = vmax.f32 %v901_v40, 0.0 }
 0x249   : > { %v981_v45 = vpack.c.bf16 %v966_v42, %v965_v41 }
 0x24a   : > { %v980_v46 = vpack.c.bf16 %v964_v44, %v963_v43  ;;  %v2582_v47 = vpop.f32.mrb[12].mxu1 }
 0x24b   : > { %v922_v48 = vadd.f32 %v2582_v47, %v3467_v18  ;;  %v913_v49 = vpop.f32.mrb[13].mxu1 }
 0x24c   : > { %v914_v50 = vadd.f32 %v3467_v18, %v913_v49  ;;  %v2583_v51 = vpop.f32.mrb[14].mxu1  ;;  %2612 = vmatprep.mubr.bf16.mxu0 %v980_v46 }
 0x24d   : > { %v925_v52 = vadd.f32 %v2583_v51, %v3467_v18  ;;  %v916_v53 = vpop.f32.mrb[15].mxu1  ;;  %2613 = vmatmul.mubr.bf16.gmra.mrb[20].mxu0 %v981_v45  ;;  %v969_v55 = vmax.f32 %v922_v48, 0.0 }
 0x24e   : > { %v917_v54 = vadd.f32 %v3467_v18, %v916_v53  ;;  %v967_v57 = vmax.f32 %v914_v50, 0.0 }
 0x24f   : > { %v970_v56 = vmax.f32 %v925_v52, 0.0 }
 0x250   : > { %v968_v58 = vmax.f32 %v917_v54, 0.0 }
 0x251   : > { %v983_v59 = vpack.c.bf16 %v970_v56, %v969_v55 }
 0x252   : > { %v982_v60 = vpack.c.bf16 %v968_v58, %v967_v57  ;;  %v2586_v61 = vpop.f32.mrb[16].mxu1 }
 0x253   : > { %v938_v62 = vadd.f32 %v2586_v61, %v3467_v18  ;;  %v929_v63 = vpop.f32.mrb[17].mxu1 }
 0x254   : > { %v930_v0 = vadd.f32 %v3467_v18, %v929_v63  ;;  %v2587_v1 = vpop.f32.mrb[18].mxu1  ;;  %2616 = vmatprep.mubr.bf16.mxu0 %v982_v60 }
 0x255   : > { %v941_v2 = vadd.f32 %v2587_v1, %v3467_v18  ;;  %v932_v3 = vpop.f32.mrb[19].mxu1  ;;  %2617 = vmatmul.mubr.bf16.gmra.mrb[24].mxu0 %v983_v59  ;;  %v973_v5 = vmax.f32 %v938_v62, 0.0 }
 0x256   : > { %v933_v4 = vadd.f32 %v3467_v18, %v932_v3  ;;  %v971_v7 = vmax.f32 %v930_v0, 0.0 }
 0x257   : > { %v974_v6 = vmax.f32 %v941_v2, 0.0 }
 0x258   : > { %v972_v8 = vmax.f32 %v933_v4, 0.0 }
 0x259   : > { %v985_v9 = vpack.c.bf16 %v974_v6, %v973_v5 }
 0x25a   : > { %v984_v10 = vpack.c.bf16 %v972_v8, %v971_v7  ;;  %v2590_v11 = vpop.f32.mrb[20].mxu1 }
 0x25b   : > { %v954_v12 = vadd.f32 %v2590_v11, %v3467_v18  ;;  %v945_v13 = vpop.f32.mrb[21].mxu1 }
 0x25c   : > { %v946_v14 = vadd.f32 %v3467_v18, %v945_v13  ;;  %v2591_v15 = vpop.f32.mrb[22].mxu1  ;;  %2620 = vmatprep.mubr.bf16.mxu0 %v984_v10 }
 0x25d   : > { %v948_v16 = vpop.f32.mrb[23].mxu1  ;;  %2621 = vmatmul.mubr.bf16.gmra.mrb[28].mxu0 %v985_v9  ;;  %v977_v19 = vmax.f32 %v954_v12, 0.0 }
 0x25e   : > { %v949_v17 = vadd.f32 %v3467_v18, %v948_v16  ;;  %v975_v20 = vmax.f32 %v946_v14, 0.0  ;;  %v2894_v18 = vld [vmem:[#allocation5] sm:$0xff]  }
 0x25f   : > { %v987_v23 = vpack.c.bf16 %v977_v19, %v977_v19  ;;  %2664 = vmatprep.subr.bf16.mxu0 %v2894_v18 }
 0x260   : > { %v976_v21 = vmax.f32 %v949_v17, 0.0  ;;  %2665 = vmatpush3.bf16.msra.mxu0 %v2894_v18 }
 0x261   : > { %2666 = vmatprep.subr.bf16.mxu0 %v2895_v26 }
 0x262   : > { %v986_v22 = vpack.c.bf16 %v976_v21, %v975_v20 }
 0x264   : > { %2624 = vmatprep.mubr.bf16.mxu0 %v986_v22  ;;  %2667 = vmatpush3.bf16.msra.mxu0 %v2895_v26 }
 0x265   : > { %2625 = vmatmul.mubr.bf16.gmra.mrb[32].mxu0 %v987_v23  ;;  %2668 = vmatprep.subr.bf16.mxu0 %v2896_v27 }
 0x268   : > { %2669 = vmatpush3.bf16.msra.mxu0 %v2896_v27 }
 0x269   : > { %2670 = vmatprep.subr.bf16.mxu0 %v2897_v28 }
 0x26c   : > { %2671 = vmatpush3.bf16.msra.mxu0 %v2897_v28 }
 0x26d   : > { %2672 = vmatprep.subr.bf16.mxu0 %v2898_v29 }
 0x270   : > { %2673 = vmatpush3.bf16.msra.mxu0 %v2898_v29 }
 0x271   : > { %2674 = vmatprep.subr.bf16.mxu0 %v2899_v30 }
 0x274   : > { %2675 = vmatpush3.bf16.msra.mxu0 %v2899_v30 }
 0x318   : > { %v2610_v32 = vpop.f32.mrb[16].mxu0 }
 0x319   : > { %v1102_v33 = vadd.f32 %v2610_v32, %v3497_v31  ;;  %v1093_v34 = vpop.f32.mrb[17].mxu0 }
 0x31a   : > { %v1094_v35 = vadd.f32 %v3497_v31, %v1093_v34  ;;  %v2611_v36 = vpop.f32.mrb[18].mxu0 }
 0x31b   : > { %v1105_v37 = vadd.f32 %v2611_v36, %v3497_v31  ;;  %v1096_v38 = vpop.f32.mrb[19].mxu0  ;;  %v1173_v40 = vmax.f32 %v1102_v33, 0.0 }
 0x31c   : > { %v1097_v39 = vadd.f32 %v3497_v31, %v1096_v38  ;;  %v1171_v42 = vmax.f32 %v1094_v35, 0.0  ;;  %v2901_v38 = vld [vmem:[#allocation5 + $0x38] sm:$0xff]  }
 0x31d   : > { %v1174_v41 = vmax.f32 %v1105_v37, 0.0  ;;  %v2900_v37 = vld [vmem:[#allocation5 + $0x30] sm:$0xff]  }
 0x31e   : > { %v1172_v43 = vmax.f32 %v1097_v39, 0.0  ;;  %2676 = vmatprep.subr.bf16.mxu0 %v2900_v37  ;;  %v2902_v39 = vld [vmem:[#allocation7] sm:$0xff]  }
 0x31f   : > { %v1191_v44 = vpack.c.bf16 %v1174_v41, %v1173_v40  ;;  %2677 = vmatpush3.bf16.msra.mxu0 %v2900_v37  ;;  %v2903_v40 = vld [vmem:[#allocation7 + $0x8] sm:$0xff]   ;;  %2700 = vmatprep.subr.bf16.mxu1 %v2902_v39  ;;  %v2904_v41 = vld [vmem:[#allocation7 + $0x10] sm:$0xff]  }
 0x320   : > { %v1190_v45 = vpack.c.bf16 %v1172_v43, %v1171_v42  ;;  %v2614_v46 = vpop.f32.mrb[20].mxu0  ;;  %2678 = vmatprep.subr.bf16.mxu0 %v2901_v38  ;;  %v2906_v42 = vld [vmem:[#allocation7 + $0x20] sm:$0xff]   ;;  %v2907_v43 = vld [vmem:[#allocation7 + $0x28] sm:$0xff]  }
 0x321   : > { %v1118_v47 = vadd.f32 %v2614_v46, %v3497_v31  ;;  %v1109_v48 = vpop.f32.mrb[21].mxu0 }
 0x322   : > { %v1110_v49 = vadd.f32 %v3497_v31, %v1109_v48  ;;  %v2615_v50 = vpop.f32.mrb[22].mxu0  ;;  %2644 = vmatprep.mubr.bf16.mxu1 %v1190_v45 }
 0x323   : > { %v1121_v51 = vadd.f32 %v2615_v50, %v3497_v31  ;;  %v1112_v52 = vpop.f32.mrb[23].mxu0  ;;  %2645 = vmatmul.mubr.bf16.vlgmr.msra.gmra.mrb[24].mxu1 %v1191_v44  ;;  %v1177_v54 = vmax.f32 %v1118_v47, 0.0  ;;  %2679 = vmatpush3.bf16.msra.mxu0 %v2901_v38  ;;  %v3521_v44 = vld [vmem:[%s3667_s7] ss:$0 sm:$0xff] }
 0x324   : > { %v1113_v53 = vadd.f32 %v3497_v31, %v1112_v52  ;;  %v1175_v56 = vmax.f32 %v1110_v49, 0.0  ;;  %2701 = vmatpush3.bf16.msra.mxu1 %v2902_v39 }
 0x325   : > { %v1178_v55 = vmax.f32 %v1121_v51, 0.0  ;;  %2702 = vmatprep.subr.bf16.mxu1 %v2903_v40 }
 0x326   : > { %v1176_v57 = vmax.f32 %v1113_v53, 0.0 }
 0x327   : > { %v1193_v58 = vpack.c.bf16 %v1178_v55, %v1177_v54 }
 0x328   : > { %v1192_v59 = vpack.c.bf16 %v1176_v57, %v1175_v56  ;;  %v2618_v60 = vpop.f32.mrb[24].mxu0  ;;  %2703 = vmatpush3.bf16.msra.mxu1 %v2903_v40 }
 0x329   : > { %v1134_v61 = vadd.f32 %v2618_v60, %v3497_v31  ;;  %v1125_v62 = vpop.f32.mrb[25].mxu0  ;;  %2704 = vmatprep.subr.bf16.mxu1 %v2904_v41 }
 0x32a   : > { %v1126_v63 = vadd.f32 %v3497_v31, %v1125_v62  ;;  %v2619_v0 = vpop.f32.mrb[26].mxu0  ;;  %2648 = vmatprep.mubr.bf16.mxu1 %v1192_v59 }
 0x32b   : > { %v1137_v1 = vadd.f32 %v2619_v0, %v3497_v31  ;;  %v1128_v2 = vpop.f32.mrb[27].mxu0  ;;  %2649 = vmatmul.mubr.bf16.gmra.mrb[28].mxu1 %v1193_v58  ;;  %v1181_v4 = vmax.f32 %v1134_v61, 0.0 }
 0x32c   : > { %v1129_v3 = vadd.f32 %v3497_v31, %v1128_v2  ;;  %v1179_v6 = vmax.f32 %v1126_v63, 0.0  ;;  %2705 = vmatpush3.bf16.msra.mxu1 %v2904_v41 }
 0x32d   : > { %v1182_v5 = vmax.f32 %v1137_v1, 0.0 }
 0x32e   : > { %v1180_v7 = vmax.f32 %v1129_v3, 0.0 }
 0x32f   : > { %v1195_v8 = vpack.c.bf16 %v1182_v5, %v1181_v4 }
 0x330   : > { %v1194_v9 = vpack.c.bf16 %v1180_v7, %v1179_v6  ;;  %v2622_v10 = vpop.f32.mrb[28].mxu0 }
 0x331   : > { %v1150_v11 = vadd.f32 %v2622_v10, %v3497_v31  ;;  %v1141_v12 = vpop.f32.mrb[29].mxu0 }
 0x332   : > { %v1142_v13 = vadd.f32 %v3497_v31, %v1141_v12  ;;  %v2623_v14 = vpop.f32.mrb[30].mxu0  ;;  %2652 = vmatprep.mubr.bf16.mxu1 %v1194_v9 }
 0x333   : > { %v1153_v15 = vadd.f32 %v2623_v14, %v3497_v31  ;;  %v1144_v16 = vpop.f32.mrb[31].mxu0  ;;  %2653 = vmatmul.mubr.bf16.gmra.mrb[32].mxu1 %v1195_v8  ;;  %v1185_v19 = vmax.f32 %v1150_v11, 0.0 }
 0x334   : > { %v1145_v17 = vadd.f32 %v3497_v31, %v1144_v16  ;;  %v1183_v21 = vmax.f32 %v1142_v13, 0.0 }
 0x335   : > { %v1186_v20 = vmax.f32 %v1153_v15, 0.0 }
 0x336   : > { %v1184_v22 = vmax.f32 %v1145_v17, 0.0 }
 0x337   : > { %v1197_v23 = vpack.c.bf16 %v1186_v20, %v1185_v19 }
 0x338   : > { %v1196_v24 = vpack.c.bf16 %v1184_v22, %v1183_v21  ;;  %v2626_v25 = vpop.f32.mrb[32].mxu0 }
 0x339   : > { %v1166_v18 = vadd.f32 %v2626_v25, %v3497_v31  ;;  %v1157_v26 = vpop.f32.mrb[33].mxu0 }
 0x33a   : > { %v1158_v27 = vadd.f32 %v3497_v31, %v1157_v26  ;;  %v2627_v28 = vpop.f32.mrb[34].mxu0  ;;  %2656 = vmatprep.mubr.bf16.mxu1 %v1196_v24 }
 0x33b   : > { %v1160_v29 = vpop.f32.mrb[35].mxu0  ;;  %2657 = vmatmul.mubr.bf16.gmra.mrb[36].mxu1 %v1197_v23  ;;  %v1189_v32 = vmax.f32 %v1166_v18, 0.0 }
 0x33c   : > { %v1161_v30 = vadd.f32 %v3497_v31, %v1160_v29  ;;  %v1187_v33 = vmax.f32 %v1158_v27, 0.0  ;;  %v2905_v31 = vld [vmem:[#allocation7 + $0x18] sm:$0xff]  }
 0x33d   : > { %v1199_v36 = vpack.c.bf16 %v1189_v32, %v1189_v32  ;;  %2706 = vmatprep.subr.bf16.mxu1 %v2905_v31 }
 0x33e   : > { %v1188_v34 = vmax.f32 %v1161_v30, 0.0  ;;  %2707 = vmatpush3.bf16.msra.mxu1 %v2905_v31 }
 0x33f   : > { %2708 = vmatprep.subr.bf16.mxu1 %v2906_v42 }
 0x340   : > { %v1198_v35 = vpack.c.bf16 %v1188_v34, %v1187_v33 }
 0x342   : > { %2660 = vmatprep.mubr.bf16.mxu1 %v1198_v35  ;;  %2709 = vmatpush3.bf16.msra.mxu1 %v2906_v42 }
 0x343   : > { %2661 = vmatmul.mubr.bf16.gmra.mrb[40].mxu1 %v1199_v36  ;;  %2710 = vmatprep.subr.bf16.mxu1 %v2907_v43 }
 0x346   : > { %2711 = vmatpush3.bf16.msra.mxu1 %v2907_v43 }
 0x3f6   : > { %v2646_v45 = vpop.f32.mrb[24].mxu1 }
 0x3f7   : > { %v1314_v46 = vadd.f32 %v2646_v45, %v3521_v44  ;;  %v1305_v47 = vpop.f32.mrb[25].mxu1 }
 0x3f8   : > { %v1306_v48 = vadd.f32 %v3521_v44, %v1305_v47  ;;  %v2647_v49 = vpop.f32.mrb[26].mxu1 }
 0x3f9   : > { %v1317_v50 = vadd.f32 %v2647_v49, %v3521_v44  ;;  %v1308_v51 = vpop.f32.mrb[27].mxu1  ;;  %v1385_v53 = vmax.f32 %v1314_v46, 0.0 }
 0x3fa   : > { %v1309_v52 = vadd.f32 %v3521_v44, %v1308_v51  ;;  %v1383_v55 = vmax.f32 %v1306_v48, 0.0  ;;  %v2909_v51 = vld [vmem:[#allocation7 + $0x38] sm:$0xff]  }
 0x3fb   : > { %v1386_v54 = vmax.f32 %v1317_v50, 0.0  ;;  %v2908_v50 = vld [vmem:[#allocation7 + $0x30] sm:$0xff]  }
 0x3fc   : > { %v1384_v56 = vmax.f32 %v1309_v52, 0.0  ;;  %2712 = vmatprep.subr.bf16.mxu1 %v2908_v50  ;;  %v2910_v52 = vld [vmem:[#allocation8] sm:$0xff]  }
 0x3fd   : > { %v1403_v57 = vpack.c.bf16 %v1386_v54, %v1385_v53  ;;  %2713 = vmatpush3.bf16.msra.mxu1 %v2908_v50  ;;  %v2911_v53 = vld [vmem:[#allocation8 + $0x8] sm:$0xff]   ;;  %2736 = vmatprep.subr.bf16.mxu0 %v2910_v52  ;;  %v2912_v54 = vld [vmem:[#allocation8 + $0x10] sm:$0xff]  }
 0x3fe   : > { %v1402_v58 = vpack.c.bf16 %v1384_v56, %v1383_v55  ;;  %v2650_v59 = vpop.f32.mrb[28].mxu1  ;;  %2714 = vmatprep.subr.bf16.mxu1 %v2909_v51  ;;  %v2914_v55 = vld [vmem:[#allocation8 + $0x20] sm:$0xff]   ;;  %v2915_v56 = vld [vmem:[#allocation8 + $0x28] sm:$0xff]  }
 0x3ff   : > { %v1330_v60 = vadd.f32 %v2650_v59, %v3521_v44  ;;  %v1321_v61 = vpop.f32.mrb[29].mxu1 }
 0x400   : > { %v1322_v62 = vadd.f32 %v3521_v44, %v1321_v61  ;;  %v2651_v63 = vpop.f32.mrb[30].mxu1  ;;  %2680 = vmatprep.mubr.bf16.mxu0 %v1402_v58 }
 0x401   : > { %v1333_v0 = vadd.f32 %v2651_v63, %v3521_v44  ;;  %v1324_v1 = vpop.f32.mrb[31].mxu1  ;;  %2681 = vmatmul.mubr.bf16.vlgmr.msra.gmra.mrb[36].mxu0 %v1403_v57  ;;  %v1389_v3 = vmax.f32 %v1330_v60, 0.0  ;;  %2715 = vmatpush3.bf16.msra.mxu1 %v2909_v51  ;;  %v3545_v57 = vld [vmem:[%s3669_s9] ss:$0 sm:$0xff] }
 0x402   : > { %v1325_v2 = vadd.f32 %v3521_v44, %v1324_v1  ;;  %v1387_v5 = vmax.f32 %v1322_v62, 0.0  ;;  %2737 = vmatpush3.bf16.msra.mxu0 %v2910_v52 }
 0x403   : > { %v1390_v4 = vmax.f32 %v1333_v0, 0.0  ;;  %2738 = vmatprep.subr.bf16.mxu0 %v2911_v53 }
 0x404   : > { %v1388_v6 = vmax.f32 %v1325_v2, 0.0 }
 0x405   : > { %v1405_v7 = vpack.c.bf16 %v1390_v4, %v1389_v3 }
 0x406   : > { %v1404_v8 = vpack.c.bf16 %v1388_v6, %v1387_v5  ;;  %v2654_v9 = vpop.f32.mrb[32].mxu1  ;;  %2739 = vmatpush3.bf16.msra.mxu0 %v2911_v53 }
 0x407   : > { %v1346_v10 = vadd.f32 %v2654_v9, %v3521_v44  ;;  %v1337_v11 = vpop.f32.mrb[33].mxu1  ;;  %2740 = vmatprep.subr.bf16.mxu0 %v2912_v54 }
 0x408   : > { %v1338_v12 = vadd.f32 %v3521_v44, %v1337_v11  ;;  %v2655_v13 = vpop.f32.mrb[34].mxu1  ;;  %2684 = vmatprep.mubr.bf16.mxu0 %v1404_v8 }
 0x409   : > { %v1349_v14 = vadd.f32 %v2655_v13, %v3521_v44  ;;  %v1340_v15 = vpop.f32.mrb[35].mxu1  ;;  %2685 = vmatmul.mubr.bf16.gmra.mrb[40].mxu0 %v1405_v7  ;;  %v1393_v17 = vmax.f32 %v1346_v10, 0.0 }
 0x40a   : > { %v1341_v16 = vadd.f32 %v3521_v44, %v1340_v15  ;;  %v1391_v20 = vmax.f32 %v1338_v12, 0.0  ;;  %2741 = vmatpush3.bf16.msra.mxu0 %v2912_v54 }
 0x40b   : > { %v1394_v19 = vmax.f32 %v1349_v14, 0.0 }
 0x40c   : > { %v1392_v21 = vmax.f32 %v1341_v16, 0.0 }
 0x40d   : > { %v1407_v22 = vpack.c.bf16 %v1394_v19, %v1393_v17 }
 0x40e   : > { %v1406_v23 = vpack.c.bf16 %v1392_v21, %v1391_v20  ;;  %v2658_v24 = vpop.f32.mrb[36].mxu1 }
 0x40f   : > { %v1362_v25 = vadd.f32 %v2658_v24, %v3521_v44  ;;  %v1353_v18 = vpop.f32.mrb[37].mxu1 }
 0x410   : > { %v1354_v26 = vadd.f32 %v3521_v44, %v1353_v18  ;;  %v2659_v27 = vpop.f32.mrb[38].mxu1  ;;  %2688 = vmatprep.mubr.bf16.mxu0 %v1406_v23 }
 0x411   : > { %v1365_v28 = vadd.f32 %v2659_v27, %v3521_v44  ;;  %v1356_v29 = vpop.f32.mrb[39].mxu1  ;;  %2689 = vmatmul.mubr.bf16.gmra.mrb[44].mxu0 %v1407_v22  ;;  %v1397_v32 = vmax.f32 %v1362_v25, 0.0 }
 0x412   : > { %v1357_v30 = vadd.f32 %v3521_v44, %v1356_v29  ;;  %v1395_v34 = vmax.f32 %v1354_v26, 0.0 }
 0x413   : > { %v1398_v33 = vmax.f32 %v1365_v28, 0.0 }
 0x414   : > { %v1396_v35 = vmax.f32 %v1357_v30, 0.0 }
 0x415   : > { %v1409_v36 = vpack.c.bf16 %v1398_v33, %v1397_v32 }
 0x416   : > { %v1408_v37 = vpack.c.bf16 %v1396_v35, %v1395_v34  ;;  %v2662_v38 = vpop.f32.mrb[40].mxu1 }
 0x417   : > { %v1378_v39 = vadd.f32 %v2662_v38, %v3521_v44  ;;  %v1369_v40 = vpop.f32.mrb[41].mxu1 }
 0x418   : > { %v1370_v41 = vadd.f32 %v3521_v44, %v1369_v40  ;;  %v2663_v31 = vpop.f32.mrb[42].mxu1  ;;  %2692 = vmatprep.mubr.bf16.mxu0 %v1408_v37 }
 0x419   : > { %v1372_v42 = vpop.f32.mrb[43].mxu1  ;;  %2693 = vmatmul.mubr.bf16.gmra.mrb[48].mxu0 %v1409_v36  ;;  %v1401_v45 = vmax.f32 %v1378_v39, 0.0 }
 0x41a   : > { %v1373_v43 = vadd.f32 %v3521_v44, %v1372_v42  ;;  %v1399_v46 = vmax.f32 %v1370_v41, 0.0  ;;  %v2913_v44 = vld [vmem:[#allocation8 + $0x18] sm:$0xff]  }
 0x41b   : > { %v1411_v49 = vpack.c.bf16 %v1401_v45, %v1401_v45  ;;  %2742 = vmatprep.subr.bf16.mxu0 %v2913_v44 }
 0x41c   : > { %v1400_v47 = vmax.f32 %v1373_v43, 0.0  ;;  %2743 = vmatpush3.bf16.msra.mxu0 %v2913_v44 }
 0x41d   : > { %2744 = vmatprep.subr.bf16.mxu0 %v2914_v55 }
 0x41e   : > { %v1410_v48 = vpack.c.bf16 %v1400_v47, %v1399_v46 }
 0x420   : > { %2696 = vmatprep.mubr.bf16.mxu0 %v1410_v48  ;;  %2745 = vmatpush3.bf16.msra.mxu0 %v2914_v55 }
 0x421   : > { %2697 = vmatmul.mubr.bf16.gmra.mrb[52].mxu0 %v1411_v49  ;;  %2746 = vmatprep.subr.bf16.mxu0 %v2915_v56 }
 0x424   : > { %2747 = vmatpush3.bf16.msra.mxu0 %v2915_v56 }
 0x4d4   : > { %v2682_v58 = vpop.f32.mrb[36].mxu0 }
 0x4d5   : > { %v1526_v59 = vadd.f32 %v2682_v58, %v3545_v57  ;;  %v1517_v60 = vpop.f32.mrb[37].mxu0 }
 0x4d6   : > { %v1518_v61 = vadd.f32 %v3545_v57, %v1517_v60  ;;  %v2683_v62 = vpop.f32.mrb[38].mxu0 }
 0x4d7   : > { %v1529_v63 = vadd.f32 %v2683_v62, %v3545_v57  ;;  %v1520_v0 = vpop.f32.mrb[39].mxu0  ;;  %v1597_v2 = vmax.f32 %v1526_v59, 0.0 }
 0x4d8   : > { %v1521_v1 = vadd.f32 %v3545_v57, %v1520_v0  ;;  %v1595_v4 = vmax.f32 %v1518_v61, 0.0  ;;  %v2917_v0 = vld [vmem:[#allocation8 + $0x38] sm:$0xff]  }
 0x4d9   : > { %v1598_v3 = vmax.f32 %v1529_v63, 0.0  ;;  %v2916_v63 = vld [vmem:[#allocation8 + $0x30] sm:$0xff]  }
 0x4da   : > { %v1596_v5 = vmax.f32 %v1521_v1, 0.0  ;;  %2748 = vmatprep.subr.bf16.mxu0 %v2916_v63  ;;  %v3569_v1 = vld [vmem:[%s3671_s11] ss:$0 sm:$0xff] }
 0x4db   : > { %v1615_v6 = vpack.c.bf16 %v1598_v3, %v1597_v2  ;;  %2749 = vmatpush3.bf16.msra.mxu0 %v2916_v63 }
 0x4dc   : > { %v1614_v7 = vpack.c.bf16 %v1596_v5, %v1595_v4  ;;  %v2686_v8 = vpop.f32.mrb[40].mxu0  ;;  %2750 = vmatprep.subr.bf16.mxu0 %v2917_v0 }
 0x4dd   : > { %v1542_v9 = vadd.f32 %v2686_v8, %v3545_v57  ;;  %v1533_v10 = vpop.f32.mrb[41].mxu0 }
 0x4de   : > { %v1534_v11 = vadd.f32 %v3545_v57, %v1533_v10  ;;  %v2687_v12 = vpop.f32.mrb[42].mxu0  ;;  %2716 = vmatprep.mubr.bf16.mxu1 %v1614_v7 }
 0x4df   : > { %v1545_v13 = vadd.f32 %v2687_v12, %v3545_v57  ;;  %v1536_v14 = vpop.f32.mrb[43].mxu0  ;;  %2717 = vmatmul.mubr.bf16.vlgmr.msra.gmra.mrb[44].mxu1 %v1615_v6  ;;  %v1601_v16 = vmax.f32 %v1542_v9, 0.0  ;;  %2751 = vmatpush3.bf16.msra.mxu0 %v2917_v0 }
 0x4e0   : > { %v1537_v15 = vadd.f32 %v3545_v57, %v1536_v14  ;;  %v1599_v19 = vmax.f32 %v1534_v11, 0.0 }
 0x4e1   : > { %v1602_v17 = vmax.f32 %v1545_v13, 0.0 }
 0x4e2   : > { %v1600_v20 = vmax.f32 %v1537_v15, 0.0 }
 0x4e3   : > { %v1617_v21 = vpack.c.bf16 %v1602_v17, %v1601_v16 }
 0x4e4   : > { %v1616_v22 = vpack.c.bf16 %v1600_v20, %v1599_v19  ;;  %v2690_v23 = vpop.f32.mrb[44].mxu0 }
 0x4e5   : > { %v1558_v24 = vadd.f32 %v2690_v23, %v3545_v57  ;;  %v1549_v25 = vpop.f32.mrb[45].mxu0 }
 0x4e6   : > { %v1550_v18 = vadd.f32 %v3545_v57, %v1549_v25  ;;  %v2691_v26 = vpop.f32.mrb[46].mxu0  ;;  %2720 = vmatprep.mubr.bf16.mxu1 %v1616_v22 }
 0x4e7   : > { %v1561_v27 = vadd.f32 %v2691_v26, %v3545_v57  ;;  %v1552_v28 = vpop.f32.mrb[47].mxu0  ;;  %2721 = vmatmul.mubr.bf16.gmra.mrb[48].mxu1 %v1617_v21  ;;  %v1605_v30 = vmax.f32 %v1558_v24, 0.0 }
 0x4e8   : > { %v1553_v29 = vadd.f32 %v3545_v57, %v1552_v28  ;;  %v1603_v33 = vmax.f32 %v1550_v18, 0.0 }
 0x4e9   : > { %v1606_v32 = vmax.f32 %v1561_v27, 0.0 }
 0x4ea   : > { %v1604_v34 = vmax.f32 %v1553_v29, 0.0 }
 0x4eb   : > { %v1619_v35 = vpack.c.bf16 %v1606_v32, %v1605_v30 }
 0x4ec   : > { %v1618_v36 = vpack.c.bf16 %v1604_v34, %v1603_v33  ;;  %v2694_v37 = vpop.f32.mrb[48].mxu0 }
 0x4ed   : > { %v1574_v38 = vadd.f32 %v2694_v37, %v3545_v57  ;;  %v1565_v39 = vpop.f32.mrb[49].mxu0 }
 0x4ee   : > { %v1566_v40 = vadd.f32 %v3545_v57, %v1565_v39  ;;  %v2695_v41 = vpop.f32.mrb[50].mxu0  ;;  %2724 = vmatprep.mubr.bf16.mxu1 %v1618_v36 }
 0x4ef   : > { %v1577_v31 = vadd.f32 %v2695_v41, %v3545_v57  ;;  %v1568_v42 = vpop.f32.mrb[51].mxu0  ;;  %2725 = vmatmul.mubr.bf16.gmra.mrb[52].mxu1 %v1619_v35  ;;  %v1609_v45 = vmax.f32 %v1574_v38, 0.0 }
 0x4f0   : > { %v1569_v43 = vadd.f32 %v3545_v57, %v1568_v42  ;;  %v1607_v47 = vmax.f32 %v1566_v40, 0.0 }
 0x4f1   : > { %v1610_v46 = vmax.f32 %v1577_v31, 0.0 }
 0x4f2   : > { %v1608_v48 = vmax.f32 %v1569_v43, 0.0 }
 0x4f3   : > { %v1621_v49 = vpack.c.bf16 %v1610_v46, %v1609_v45 }
 0x4f4   : > { %v1620_v50 = vpack.c.bf16 %v1608_v48, %v1607_v47  ;;  %v2698_v51 = vpop.f32.mrb[52].mxu0 }
 0x4f5   : > { %v1590_v52 = vadd.f32 %v2698_v51, %v3545_v57  ;;  %v1581_v53 = vpop.f32.mrb[53].mxu0 }
 0x4f6   : > { %v1582_v54 = vadd.f32 %v3545_v57, %v1581_v53  ;;  %v2699_v44 = vpop.f32.mrb[54].mxu0  ;;  %2728 = vmatprep.mubr.bf16.mxu1 %v1620_v50 }
 0x4f7   : > { %v1584_v55 = vpop.f32.mrb[55].mxu0  ;;  %2729 = vmatmul.mubr.bf16.gmra.mrb[56].mxu1 %v1621_v49  ;;  %v1613_v58 = vmax.f32 %v1590_v52, 0.0 }
 0x4f8   : > { %v1585_v56 = vadd.f32 %v3545_v57, %v1584_v55  ;;  %v1611_v59 = vmax.f32 %v1582_v54, 0.0 }
 0x4f9   : > { %v1623_v62 = vpack.c.bf16 %v1613_v58, %v1613_v58 }
 0x4fa   : > { %v1612_v60 = vmax.f32 %v1585_v56, 0.0 }
 0x4fc   : > { %v1622_v61 = vpack.c.bf16 %v1612_v60, %v1611_v59 }
 0x4fe   : > { %2732 = vmatprep.mubr.bf16.mxu1 %v1622_v61 }
 0x4ff   : > { %2733 = vmatmul.mubr.bf16.gmra.mrb[60].mxu1 %v1623_v62 }
 0x5b2   : > { %v2718_v2 = vpop.f32.mrb[44].mxu1 }
 0x5b3   : > { %v1738_v57 = vadd.f32 %v2718_v2, %v3569_v1  ;;  %v1729_v3 = vpop.f32.mrb[45].mxu1 }
 0x5b4   : > { %v1730_v4 = vadd.f32 %v3569_v1, %v1729_v3  ;;  %v2719_v5 = vpop.f32.mrb[46].mxu1 }
 0x5b5   : > { %v1741_v6 = vadd.f32 %v2719_v5, %v3569_v1  ;;  %v1732_v7 = vpop.f32.mrb[47].mxu1  ;;  %v1809_v9 = vmax.f32 %v1738_v57, 0.0 }
 0x5b6   : > { %v1733_v8 = vadd.f32 %v3569_v1, %v1732_v7  ;;  %v1807_v11 = vmax.f32 %v1730_v4, 0.0  ;;  %v2311_v7 = vld [vmem:[%s3712_s13] ss:$0 sm:$0xff] }
 0x5b7   : > { %v1810_v10 = vmax.f32 %v1741_v6, 0.0 }
 0x5b8   : > { %v1808_v12 = vmax.f32 %v1733_v8, 0.0 }
 0x5b9   : > { %v1827_v13 = vpack.c.bf16 %v1810_v10, %v1809_v9 }
 0x5ba   : > { %v1826_v14 = vpack.c.bf16 %v1808_v12, %v1807_v11  ;;  %v2722_v15 = vpop.f32.mrb[48].mxu1 }
 0x5bb   : > { %v1754_v16 = vadd.f32 %v2722_v15, %v3569_v1  ;;  %v1745_v17 = vpop.f32.mrb[49].mxu1 }
 0x5bc   : > { %v1746_v19 = vadd.f32 %v3569_v1, %v1745_v17  ;;  %v2723_v20 = vpop.f32.mrb[50].mxu1  ;;  %2752 = vmatprep.mubr.bf16.mxu0 %v1826_v14 }
 0x5bd   : > { %v1757_v21 = vadd.f32 %v2723_v20, %v3569_v1  ;;  %v1748_v22 = vpop.f32.mrb[51].mxu1  ;;  %2753 = vmatmul.mubr.bf16.vlgmr.msra.gmra.mrb[56].mxu0 %v1827_v13  ;;  %v1813_v24 = vmax.f32 %v1754_v16, 0.0 }
 0x5be   : > { %v1749_v23 = vadd.f32 %v3569_v1, %v1748_v22  ;;  %v1811_v18 = vmax.f32 %v1746_v19, 0.0 }
 0x5bf   : > { %v1814_v25 = vmax.f32 %v1757_v21, 0.0 }
 0x5c0   : > { %v1812_v26 = vmax.f32 %v1749_v23, 0.0 }
 0x5c1   : > { %v1829_v27 = vpack.c.bf16 %v1814_v25, %v1813_v24 }
 0x5c2   : > { %v1828_v28 = vpack.c.bf16 %v1812_v26, %v1811_v18  ;;  %v2726_v29 = vpop.f32.mrb[52].mxu1 }
 0x5c3   : > { %v1770_v30 = vadd.f32 %v2726_v29, %v3569_v1  ;;  %v1761_v32 = vpop.f32.mrb[53].mxu1 }
 0x5c4   : > { %v1762_v33 = vadd.f32 %v3569_v1, %v1761_v32  ;;  %v2727_v34 = vpop.f32.mrb[54].mxu1  ;;  %2756 = vmatprep.mubr.bf16.mxu0 %v1828_v28 }
 0x5c5   : > { %v1773_v35 = vadd.f32 %v2727_v34, %v3569_v1  ;;  %v1764_v36 = vpop.f32.mrb[55].mxu1  ;;  %2757 = vmatmul.mubr.bf16.gmra.mrb[60].mxu0 %v1829_v27  ;;  %v1817_v38 = vmax.f32 %v1770_v30, 0.0 }
 0x5c6   : > { %v1765_v37 = vadd.f32 %v3569_v1, %v1764_v36  ;;  %v1815_v40 = vmax.f32 %v1762_v33, 0.0 }
 0x5c7   : > { %v1818_v39 = vmax.f32 %v1773_v35, 0.0 }
 0x5c8   : > { %v1816_v41 = vmax.f32 %v1765_v37, 0.0 }
 0x5c9   : > { %v1831_v31 = vpack.c.bf16 %v1818_v39, %v1817_v38 }
 0x5ca   : > { %v1830_v42 = vpack.c.bf16 %v1816_v41, %v1815_v40  ;;  %v2730_v43 = vpop.f32.mrb[56].mxu1 }
 0x5cb   : > { %v1786_v45 = vadd.f32 %v2730_v43, %v3569_v1  ;;  %v1777_v46 = vpop.f32.mrb[57].mxu1 }
 0x5cc   : > { %v1778_v47 = vadd.f32 %v3569_v1, %v1777_v46  ;;  %v2731_v48 = vpop.f32.mrb[58].mxu1  ;;  %2760 = vmatprep.mubr.bf16.mxu0 %v1830_v42 }
 0x5cd   : > { %v1789_v49 = vadd.f32 %v2731_v48, %v3569_v1  ;;  %v1780_v50 = vpop.f32.mrb[59].mxu1  ;;  %2761 = vmatmul.mubr.bf16.gmra.mrb[64].mxu0 %v1831_v31  ;;  %v1821_v52 = vmax.f32 %v1786_v45, 0.0 }
 0x5ce   : > { %v1781_v51 = vadd.f32 %v3569_v1, %v1780_v50  ;;  %v1819_v54 = vmax.f32 %v1778_v47, 0.0 }
 0x5cf   : > { %v1822_v53 = vmax.f32 %v1789_v49, 0.0 }
 0x5d0   : > { %v1820_v44 = vmax.f32 %v1781_v51, 0.0 }
 0x5d1   : > { %v1833_v55 = vpack.c.bf16 %v1822_v53, %v1821_v52 }
 0x5d2   : > { %v1832_v56 = vpack.c.bf16 %v1820_v44, %v1819_v54  ;;  %v2734_v58 = vpop.f32.mrb[60].mxu1 }
 0x5d3   : > { %v1802_v59 = vadd.f32 %v2734_v58, %v3569_v1  ;;  %v1793_v60 = vpop.f32.mrb[61].mxu1 }
 0x5d4   : > { %v1794_v61 = vadd.f32 %v3569_v1, %v1793_v60  ;;  %v2735_v62 = vpop.f32.mrb[62].mxu1  ;;  %2764 = vmatprep.mubr.bf16.mxu0 %v1832_v56 }
 0x5d5   : > { %v1796_v63 = vpop.f32.mrb[63].mxu1  ;;  %2765 = vmatmul.mubr.bf16.gmra.mrb[68].mxu0 %v1833_v55  ;;  %v1825_v2 = vmax.f32 %v1802_v59, 0.0 }
 0x5d6   : > { %v1797_v0 = vadd.f32 %v3569_v1, %v1796_v63  ;;  %v1823_v57 = vmax.f32 %v1794_v61, 0.0 }
 0x5d7   : > { %v1835_v5 = vpack.c.bf16 %v1825_v2, %v1825_v2 }
 0x5d8   : > { %v1824_v3 = vmax.f32 %v1797_v0, 0.0 }
 0x5da   : > { %v1834_v4 = vpack.c.bf16 %v1824_v3, %v1823_v57 }
 0x5dc   : > { %2768 = vmatprep.mubr.bf16.mxu0 %v1834_v4 }
 0x5dd   : > { %2769 = vmatmul.mubr.bf16.gmra.mrb[72].mxu0 %v1835_v5 }
 0x690   : > { %v2754_v6 = vpop.f32.mrb[56].mxu0 }
 0x691   : > { %v1941_v8 = vpop.f32.mrb[57].mxu0  ;;  %v1950_v10 = vadd.f32 %v2754_v6, %v2311_v7 }
 0x692   : > { %v2755_v9 = vpop.f32.mrb[58].mxu0  ;;  %v1942_v12 = vadd.f32 %v2311_v7, %v1941_v8 }
 0x693   : > { %v1953_v11 = vadd.f32 %v2755_v9, %v2311_v7  ;;  %v1944_v1 = vpop.f32.mrb[59].mxu0 }
 0x694   : > { %v1945_v13 = vadd.f32 %v2311_v7, %v1944_v1 }
 0x695   : > { %v2370_v14 = vpack.c.bf16 %v1953_v11, %v1950_v10 }
 0x696   : > { %v2365_v15 = vpack.c.bf16 %v1945_v13, %v1942_v12 }
 0x697   : > { %2407 = vst [vmem:[%s3596_s25 + $0x8] sm:$0xff] %v2370_v14  }
 0x698   : > { %2366 = vst [vmem:[%s3596_s25] sm:$0xff] %v2365_v15   ;;  %v2758_v16 = vpop.f32.mrb[60].mxu0 }
 0x699   : > { %v1957_v17 = vpop.f32.mrb[61].mxu0  ;;  %v1966_v20 = vadd.f32 %v2758_v16, %v2311_v7 }
 0x69a   : > { %v2759_v19 = vpop.f32.mrb[62].mxu0  ;;  %v1958_v23 = vadd.f32 %v2311_v7, %v1957_v17 }
 0x69b   : > { %v1969_v21 = vadd.f32 %v2759_v19, %v2311_v7  ;;  %v1960_v22 = vpop.f32.mrb[63].mxu0 }
 0x69c   : > { %v1961_v24 = vadd.f32 %v2311_v7, %v1960_v22 }
 0x69d   : > { %v2380_v25 = vpack.c.bf16 %v1969_v21, %v1966_v20 }
 0x69e   : > { %v2375_v18 = vpack.c.bf16 %v1961_v24, %v1958_v23 }
 0x69f   : > { %2409 = vst [vmem:[%s3596_s25 + $0x18] sm:$0xff] %v2380_v25  }
 0x6a0   : > { %2408 = vst [vmem:[%s3596_s25 + $0x10] sm:$0xff] %v2375_v18   ;;  %v2762_v26 = vpop.f32.mrb[64].mxu0 }
 0x6a1   : > { %v1973_v27 = vpop.f32.mrb[65].mxu0  ;;  %v1982_v29 = vadd.f32 %v2762_v26, %v2311_v7 }
 0x6a2   : > { %v2763_v28 = vpop.f32.mrb[66].mxu0  ;;  %v1974_v33 = vadd.f32 %v2311_v7, %v1973_v27 }
 0x6a3   : > { %v1985_v30 = vadd.f32 %v2763_v28, %v2311_v7  ;;  %v1976_v32 = vpop.f32.mrb[67].mxu0 }
 0x6a4   : > { %v1977_v34 = vadd.f32 %v2311_v7, %v1976_v32 }
 0x6a5   : > { %v2390_v35 = vpack.c.bf16 %v1985_v30, %v1982_v29 }
 0x6a6   : > { %v2385_v36 = vpack.c.bf16 %v1977_v34, %v1974_v33 }
 0x6a7   : > { %2411 = vst [vmem:[%s3596_s25 + $0x28] sm:$0xff] %v2390_v35  }
 0x6a8   : > { %2410 = vst [vmem:[%s3596_s25 + $0x20] sm:$0xff] %v2385_v36   ;;  %v2766_v37 = vpop.f32.mrb[68].mxu0 }
 0x6a9   : > { %v1989_v38 = vpop.f32.mrb[69].mxu0  ;;  %v1998_v40 = vadd.f32 %v2766_v37, %v2311_v7 }
 0x6aa   : > { %v2767_v39 = vpop.f32.mrb[70].mxu0  ;;  %v1990_v42 = vadd.f32 %v2311_v7, %v1989_v38 }
 0x6ab   : > { %v2001_v41 = vadd.f32 %v2767_v39, %v2311_v7  ;;  %v1992_v31 = vpop.f32.mrb[71].mxu0 }
 0x6ac   : > { %v1993_v43 = vadd.f32 %v2311_v7, %v1992_v31 }
 0x6ad   : > { %v2400_v45 = vpack.c.bf16 %v2001_v41, %v1998_v40 }
 0x6ae   : > { %v2395_v46 = vpack.c.bf16 %v1993_v43, %v1990_v42 }
 0x6af   : > { %2413 = vst [vmem:[%s3596_s25 + $0x38] sm:$0xff] %v2400_v45  }
 0x6b0   : > { %2412 = vst [vmem:[%s3596_s25 + $0x30] sm:$0xff] %v2395_v46   ;;  %v2770_v47 = vpop.f32.mrb[72].mxu0 }
 0x6b1   : > { %v2014_v48 = vadd.f32 %v2770_v47, %v2311_v7  ;;  %v2005_v49 = vpop.f32.mrb[73].mxu0 }
 0x6b2   : > { %v2771_v50 = vpop.f32.mrb[74].mxu0  ;;  %v2006_v53 = vadd.f32 %v2311_v7, %v2005_v49 }
 0x6b3   : > { %v2360_v51 = vpack.c.bf16 %v2014_v48, %v2014_v48  ;;  %v2008_v52 = vpop.f32.mrb[75].mxu0 }
 0x6b4   : > { %v2009_v54 = vadd.f32 %v2311_v7, %v2008_v52 }
 0x6b5   : > { %2114 = vst [vmem:[%s3596_s25 + $0x48] sm:$0xf] %v2360_v51 }
 0x6b6   : > { %v2405_v44 = vpack.c.bf16 %v2009_v54, %v2006_v53 }
 0x6b8   : > { %2414 = vst [vmem:[%s3596_s25 + $0x40] sm:$0xff] %v2405_v44  }
 0x6b9   : > { %3043 = shalt.err (!%p3040_p0)
}
 0x6ba   : > { %s3044_s29 = scalar_lea.hbm %s3612_s24, 1216  ;;  %s3048_s13 = scalar_lea.hbm %s3714_s23, 2432 }
 0x6bb   : > { %p3045_p10 = scmp.ne.s32.totalorder %s3612_s24, %s3044_s29  ;;  %p3049_p4 = scmp.lt.u32.totalorder %s3612_s24, %s3714_s23 }
 0x6bc   : > { %p3050_p12 = scmp.lt.u32.totalorder %s3048_s13, %s3044_s29  ;;  %p3052_p8 = scmp.lt.u32.totalorder %s3044_s29, %s3612_s24 }
 0x6bd   : > { %p3046_p2 = pnand %p3045_p10, %p3715_p11 }
 0x6be   : > { %p3051_p7 = por %p3050_p12, %p3049_p4 }
 0x6bf   : > { %p3047_p3 = pneg %p3046_p2 }
 0x6c0   : > { %p3053_p13 = por %p3052_p8, %p3051_p7 }
 0x6c2   : > { %p3054_p1 = pnand %p3053_p13, %p3047_p3 }
 0x6c4   : > { %3057 = shalt.err (!%p3054_p1)
}
 0x6c5   : > { %s3113_s15 = smov 64   ;;  %s3114_s14 = smov 4  }
 0x6c6   : > { %2791 = dma.vmem_to_hbm [thread:$0]  (%p3715_p11), %s3614_s19, 1216, %s3612_s24, %s3619_s17, %s3113_s15, %s3113_s15, %s3114_s14  }
 0x6c7 PF: > { %s3716_s30 = sld [smem:[#allocation18_spill]]  ;;  %s3717_s26 = sld [smem:[#allocation15_spill]] }
 0x6c8   : > { %s3718_s18 = sld [smem:[#allocation22_spill]] }
 0x6cd   : > { %p2818_p6 = scmp.ge.s32.totalorder %s3716_s30, 2  ;;  %s2144_s21 = sand.u32 1, %s3717_s26  }
 0x6ce   : > { %p3719_p9 = scmp.ne.s32.totalorder %s3718_s18, 0  ;;  %s2145_s22 = scalar_lea.sflag [#allocation4], %s2144_s21 }
 0x6d0   : > { %p2807_p5 = pnand %p2818_p6, %p3719_p9 }
 0x6d2   : > { %3087 = dma.done.wait (!%p2807_p5), %s2145_s22, 1216  }
 0x6d3   : > { %3089 = vsyncadd (!%p2807_p5), %s2145_s22, 4294966080  ;;  %s3720_s16 = sld [smem:[#allocation19_spill]]  ;;  %s3721_s29 = sld [smem:[#allocation16_spill]] }
 0x6d4   : > { %s3722_s30 = sld [smem:[#allocation17_spill]]  ;;  %s3723_s15 = sld [smem:[#allocation20_spill]] }
 0x6d9   : > { %p27_p0 = scmp.ge.s32.totalorder %s3720_s16, 4  }
 0x6db   :  { %29 = sbr.rel (!%p27_p0) target bundleno = 9 (0x9), region = 128 }
 0x6e2   :  { %2150 = vsyncpa [#allocation3], 1 }
 0x6e3   :  { %2152 = vsyncpa [#allocation3 + $0x1], 1 }
 0x6e4   :  { %2153 = vsyncpa [#allocation6], 1 }
 0x6e5   :  { %2154 = vsyncpa [#allocation9], 1 }
 0x6e6   :  { %2155 = vsyncpa [#allocation4], 1 }
 0x6e7   :  { %2157 = vsyncpa [#allocation4 + $0x1], 1 }

</bundles_post_ra>
